<compile_context>
chip_gen: v7x
topology: tpu7x:2x2x1
jax: 0.10.0
libtpu: 0.0.40
codegen_flags: <defaults>
</compile_context>

<pallas_src>
import functools
from math import sqrt

import jax
import jax.numpy as jnp
from jax.experimental import pallas as pl
from jax.experimental.pallas import tpu as pltpu


# ----------------------------------------------------------------------------
# Kernel (one row-block = b_blk batch rows per grid step)
# ----------------------------------------------------------------------------
def encoder_layer_kernel(x_ref, rope_ref, bias_ref,
                         wq_ref, bq_ref, wk_ref, bk_ref, wv_ref, bv_ref,
                         wo_ref, bo_ref, ln1_ref, w1cat_ref, w2_ref, ln2_ref,
                         out_ref, ctx_ref,
                         *, n_heads, key_size, b_blk, seq_len, hidden, alpha, eps):
    f32, bf16 = jnp.float32, jnp.bfloat16
    D = key_size
    Dh = D // 2
    N = seq_len

    x = x_ref[...]                                  # (M, hidden) f32 (residual path stays f32)
    x_bf = x.astype(bf16)

    # --- Q/K/V projections: ONE bf16 matmul each.  The per-head even/odd de-interleave
    #     permutation and the 1/sqrt(D) score scale are folded into Wq (RoPE is linear). ---
    q = jnp.dot(x_bf, wq_ref[...], preferred_element_type=f32) + bq_ref[...]
    k = jnp.dot(x_bf, wk_ref[...], preferred_element_type=f32) + bk_ref[...]
    v = (jnp.dot(x_bf, wv_ref[...], preferred_element_type=f32) + bv_ref[...]).astype(bf16)

    # Half-width RoPE tables (bf16): [cos_q, sin_q, cos_k, sin_k], each (M, n_heads*D/2).
    cos_q, sin_q, cos_k, sin_k = rope_ref[0], rope_ref[1], rope_ref[2], rope_ref[3]

    # --- per (batch-row, head) attention; contexts assembled into VMEM scratch ---
    for b in range(b_blk):
        rows = slice(b * N, (b + 1) * N)
        # additive key mask (0 keep / -1e30 drop); broadcast hoisted out of the head loop
        bias_full = jnp.broadcast_to(bias_ref[b], (N, N))
        for h in range(n_heads):
            half = slice(h * Dh, (h + 1) * Dh)
            lo = slice(h * D, h * D + Dh)
            hi = slice(h * D + Dh, (h + 1) * D)

            def rope_apply(t, cos_t, sin_t):
                # t already holds [t_even | t_odd] per head thanks to the weight fold.
                c = cos_t[rows, half].astype(f32)
                s = sin_t[rows, half].astype(f32)
                t0, t1 = t[rows, lo], t[rows, hi]
                return jnp.concatenate([t0 * c - t1 * s, t1 * c + t0 * s],
                                       axis=-1).astype(bf16)

            qh = rope_apply(q, cos_q, sin_q)                       # (N, D) bf16
            kh = rope_apply(k, cos_k, sin_k)                       # (N, D) bf16
            s = jnp.einsum('nd,md->nm', qh, kh,
                           preferred_element_type=f32) + bias_full
            s = s - jnp.max(s, axis=-1, keepdims=True)
            e = jnp.exp(s)
            p = e * pl.reciprocal(jnp.sum(e, axis=-1, keepdims=True), approx=True)
            ctx = jnp.dot(p.astype(bf16), v[rows, h * D:(h + 1) * D],
                          preferred_element_type=f32)              # (N, D)
            ctx_ref[rows, h * D:(h + 1) * D] = ctx

    # --- output projection: a single (M,HD)@(HD,hidden) matmul over all rows/heads ---
    postx = jnp.dot(ctx_ref[...].astype(bf16), wo_ref[...],
                    preferred_element_type=f32) + bo_ref[...]

    # --- DeepNorm 1: LayerNorm(alpha * x + postx)  (single-pass statistics) ---
    ln1 = ln1_ref[...]                              # (2, hidden): [gamma; beta]
    y = x * alpha + postx
    mu = jnp.mean(y, axis=-1, keepdims=True)
    var = jnp.mean(y * y, axis=-1, keepdims=True) - mu * mu
    x1 = (y - mu) * jax.lax.rsqrt(var + eps) * ln1[0:1, :] + ln1[1:2, :]

    # --- FFN-GLU: gate & up fused into one matmul, lane split at 4*hidden (=128) ---
    h1 = jnp.dot(x1.astype(bf16), w1cat_ref[...], preferred_element_type=f32)
    gate = jnp.maximum(h1[:, :4 * hidden], 0.0)
    up = h1[:, 4 * hidden:]
    postx2 = jnp.dot((gate * up).astype(bf16), w2_ref[...], preferred_element_type=f32)

    # --- DeepNorm 2 ---
    ln2 = ln2_ref[...]
    y2 = x1 * alpha + postx2
    mu2 = jnp.mean(y2, axis=-1, keepdims=True)
    var2 = jnp.mean(y2 * y2, axis=-1, keepdims=True) - mu2 * mu2
    # NOTE: hidden=32 (<128 lanes) -> masked store; an in-kernel relayout to a lane-dense
    # slab would cost more than the masked store saves at this width.
    out_ref[...] = (y2 - mu2) * jax.lax.rsqrt(var2 + eps) * ln2[0:1, :] + ln2[1:2, :]


# ----------------------------------------------------------------------------
# One-time parameter transform (permutation fold, scale fold, bf16 cast, packing)
# ----------------------------------------------------------------------------
def fold_encoder_params(mha_params, ffn_params, *, n_heads, key_size):
    wq, bq, wk, bk, wv, bv, wo, bo, g1, b1 = mha_params
    w1g, w1, w2, g2, b2 = ffn_params
    f32, bf16 = jnp.float32, jnp.bfloat16
    D = key_size
    # Per-head even/odd de-interleave as a matmul: t @ A = [t_even | t_odd].
    j = jnp.arange(D // 2)
    A = jnp.zeros((D, D), f32).at[2 * j, j].set(1.0).at[2 * j + 1, D // 2 + j].set(1.0)
    A_full = jnp.kron(jnp.eye(n_heads, dtype=f32), A)
    scale = 1.0 / sqrt(D)            # fold the score scale into Q (RoPE is linear)
    wq_f = ((wq @ A_full) * scale).astype(bf16)
    bq_f = (bq @ A_full) * scale                      # biases stay f32 (added post-accum)
    wk_f = (wk @ A_full).astype(bf16)
    bk_f = bk @ A_full
    w1cat = jnp.concatenate([w1g, w1], axis=1).astype(bf16)    # fused [gate | up] weight
    ln1 = jnp.concatenate([g1, b1], axis=0)           # (2, hidden)
    ln2 = jnp.concatenate([g2, b2], axis=0)
    return (wq_f, bq_f, wk_f, bk_f, wv.astype(bf16), bv, wo.astype(bf16), bo,
            ln1, w1cat, w2.astype(bf16), ln2)


# ----------------------------------------------------------------------------
# Wrapper
# ----------------------------------------------------------------------------
def _full_spec(shape):
    nd = len(shape)
    return pl.BlockSpec(shape, lambda i, _n=nd: (0,) * _n)


def _pick_row_block(batch, seq, target_rows=128):
    """Largest divisor of `batch` whose row-slab stays small and (8,.)-tileable."""
    best = 1
    for d in range(1, batch + 1):
        if batch % d:
            continue
        rows = d * seq
        if rows <= max(target_rows, seq) and (rows % 8 == 0 or d == batch):
            best = d
    if (best * seq) % 8 != 0:        # fall back to one full block (exempt from (8,128))
        best = batch
    return best


def encoder_layer_pallas(x, rope_q, rope_k, keep_mask, folded_params,
                         *, n_heads, key_size, alpha, eps=1e-5):
    B, N, hidden = x.shape
    D = key_size
    HD = n_heads * D
    HDh = n_heads * (D // 2)
    (wq_f, bq_f, wk_f, bk_f, wv_b, bv, wo_b, bo, ln1, w1cat, w2_b, ln2) = folded_params

    # Half-width RoPE tables, bf16, head-major lanes: (4, B*N, n_heads*D/2).
    def half_tables(dis):                          # dis: (B, N, H, D); last dim = [sin|cos]
        sin, cos = jnp.split(dis, 2, axis=-1)
        return cos.reshape(B * N, HDh), sin.reshape(B * N, HDh)

    cq, sq = half_tables(rope_q)
    ck, sk = half_tables(rope_k)
    rope_packed = jnp.stack([cq, sq, ck, sk], axis=0).astype(jnp.bfloat16)

    # Additive key-padding mask (0 keep / -1e30 drop).  An all-masked row degenerates to
    # uniform attention instead of torch's NaN-producing masked_fill(-inf) — acceptable.
    mask_bias = jnp.where(keep_mask, 0.0, -1e30).astype(jnp.float32).reshape(B, 1, N)

    x2d = x.reshape(B * N, hidden).astype(jnp.float32)

    b_blk = _pick_row_block(B, N)
    num_blocks = B // b_blk
    rows = b_blk * N

    kernel = functools.partial(encoder_layer_kernel, n_heads=n_heads, key_size=key_size,
                               b_blk=b_blk, seq_len=N, hidden=hidden, alpha=alpha, eps=eps)

    weight_ops = (wq_f, bq_f, wk_f, bk_f, wv_b, bv, wo_b, bo, ln1, w1cat, w2_b, ln2)

    in_specs = [
        pl.BlockSpec((rows, hidden), lambda i: (i, 0)),        # x (f32, residual path)
        pl.BlockSpec((4, rows, HDh), lambda i: (0, i, 0)),     # RoPE tables (bf16)
        pl.BlockSpec((b_blk, 1, N), lambda i: (i, 0, 0)),      # key-mask bias (f32)
    ] + [_full_spec(w.shape) for w in weight_ops]
    # TODO(synk): at production sizes mark the 12 constant weight operands single-buffered
    # (pipeline_mode=pl.Buffered(1)) so double-buffering cannot blow v7x's 64 MiB VMEM.

    out_specs = pl.BlockSpec((rows, hidden), lambda i: (i, 0))
    scratch = [pltpu.VMEM((rows, HD), jnp.float32)]            # assembled attention context

    flops = int(2 * B * N * hidden * HD * 3                    # Q/K/V projections
                + 2 * B * n_heads * N * N * D * 2              # scores + attn @ V
                + 2 * B * N * HD * hidden                      # output projection
                + 2 * B * N * hidden * hidden * 12)            # FFN (fused 8h up + 4h down)
    transcendentals = int(B * n_heads * N * (N + 1) + 4 * B * N)
    operands = (x2d, rope_packed, mask_bias) + weight_ops
    bytes_accessed = int(sum(a.size * a.dtype.itemsize for a in operands)
                         + B * N * hidden * 4)

    # VMEM limit from actual buffer sizes (double-buffered pipeline blocks + scratch +
    # margin for in-kernel temporaries), capped below v7x's 64 MiB physical VMEM.
    block_bytes = (rows * hidden * 4 + 4 * rows * HDh * 2 + b_blk * N * 4
                   + sum(w.size * w.dtype.itemsize for w in weight_ops)
                   + rows * hidden * 4)
    vmem_limit = int(min(48 * 2 ** 20,
                         max(2 * block_bytes + rows * HD * 4 + 4 * 2 ** 20, 16 * 2 ** 20)))

    grid_spec = pltpu.PrefetchScalarGridSpec(
        num_scalar_prefetch=0, grid=(num_blocks,),
        in_specs=in_specs, out_specs=out_specs, scratch_shapes=scratch)

    out2d = pl.pallas_call(
        kernel,
        out_shape=jax.ShapeDtypeStruct((B * N, hidden), jnp.float32),
        grid_spec=grid_spec,
        compiler_params=pltpu.CompilerParams(
            # Row-blocks are independent.  TODO(synk): on v7x use pltpu.CORE_PARALLEL (or a
            # leading grid axis of size 2) to guarantee both TensorCores split the batch.
            dimension_semantics=("parallel",),
            vmem_limit_bytes=vmem_limit),
        cost_estimate=pl.CostEstimate(flops=flops, transcendentals=transcendentals,
                                      bytes_accessed=bytes_accessed),
    )(x2d, rope_packed, mask_bias, *weight_ops)
    return out2d.reshape(B, N, hidden)


# ----------------------------------------------------------------------------
# Pure-JAX reference (mirrors the PyTorch forward, f32 throughout)
# ----------------------------------------------------------------------------
def _rope_ref(x, dis):
    sin, cos = jnp.split(dis, 2, axis=-1)
    x0 = x[..., 0::2]
    x1 = x[..., 1::2]
    return jnp.concatenate([x0 * cos - x1 * sin, x1 * cos + x0 * sin], axis=-1)


def _layernorm_ref(y, g, b, eps=1e-5):
    mu = jnp.mean(y, axis=-1, keepdims=True)
    var = jnp.mean((y - mu) ** 2, axis=-1, keepdims=True)
    return (y - mu) / jnp.sqrt(var + eps) * g + b


def encoder_layer_ref(x, rope_q, rope_k, keep_mask, mha_params, ffn_params,
                      *, n_heads, key_size, alpha):
    wq, bq, wk, bk, wv, bv, wo, bo, g1, b1 = mha_params
    B, N, hidden = x.shape
    q = (x @ wq + bq).reshape(B, N, n_heads, key_size)
    k = (x @ wk + bk).reshape(B, N, n_heads, key_size)
    v = (x @ wv + bv).reshape(B, N, n_heads, key_size)
    q = _rope_ref(q, rope_q)
    k = _rope_ref(k, rope_k)
    attn = jnp.einsum('bnij,bmij->binm', q, k) / sqrt(key_size)
    attn = jnp.where(keep_mask[:, None, None, :], attn, -1e30)
    attn = jax.nn.softmax(attn, axis=-1)
    ctx = jnp.einsum('binm,bmij->bnij', attn, v).reshape(B, N, n_heads * key_size)
    postx = ctx @ wo + bo
    x = _layernorm_ref(x * alpha + postx, g1, b1)

    w1g, w1, w2, g2, b2 = ffn_params
    postx = (jnp.maximum(x @ w1g, 0.0) * (x @ w1)) @ w2
    x = _layernorm_ref(x * alpha + postx, g2, b2)
    return x


# ----------------------------------------------------------------------------
# Main
# ----------------------------------------------------------------------------
if __name__ == "__main__":
    # Module hyper-parameters (consistent with the constructor asserts)
    hidden = 32                 # hidden_size % 8 == 0
    max_charge = 1
    n_head_per_mass = 1
    n_heads = (2 * max_charge + 1) * n_head_per_mass   # 3
    key_size = 16               # % 8 == 0 and <= 128
    alpha = (2.0 * 6.0) ** 0.25
    beta = (8.0 * 6.0) ** (-0.25)
    HD = n_heads * key_size

    B, N = 2, 8

    key = jax.random.PRNGKey(0)
    ks = jax.random.split(key, 20)

    def xavier(k, fan_in, fan_out, gain):
        std = gain * sqrt(2.0 / (fan_in + fan_out))
        return jax.random.normal(k, (fan_in, fan_out), jnp.float32) * std

    # MHA params (weights stored (in, out); biases (1, out))
    wq = xavier(ks[0], hidden, HD, 1.0)
    bq = jax.random.normal(ks[1], (1, HD), jnp.float32) * 0.02
    wk = xavier(ks[2], hidden, HD, 1.0)
    bk = jax.random.normal(ks[3], (1, HD), jnp.float32) * 0.02
    wv = xavier(ks[4], hidden, HD, beta)
    bv = jax.random.normal(ks[5], (1, HD), jnp.float32) * 0.02
    wo = xavier(ks[6], HD, hidden, beta)
    bo = jax.random.normal(ks[7], (1, hidden), jnp.float32) * 0.02
    g1 = jnp.ones((1, hidden), jnp.float32)
    b1 = jnp.zeros((1, hidden), jnp.float32)
    mha_params = (wq, bq, wk, bk, wv, bv, wo, bo, g1, b1)

    # FFN params (bias-free per the module)
    w1g = xavier(ks[8], hidden, 4 * hidden, beta)
    w1 = xavier(ks[9], hidden, 4 * hidden, beta)
    w2 = xavier(ks[10], 4 * hidden, hidden, beta)
    g2 = jnp.ones((1, hidden), jnp.float32)
    b2 = jnp.zeros((1, hidden), jnp.float32)
    ffn_params = (w1g, w1, w2, g2, b2)

    # Inputs
    x = jax.random.normal(ks[11], (B, N, hidden), jnp.float32)
    theta_q = jax.random.uniform(ks[12], (B, N, n_heads, key_size // 2),
                                 jnp.float32, 0.0, 6.28)
    theta_k = jax.random.uniform(ks[13], (B, N, n_heads, key_size // 2),
                                 jnp.float32, 0.0, 6.28)
    # product_ion_info layout: last dim = [sin | cos]
    rope_q = jnp.concatenate([jnp.sin(theta_q), jnp.cos(theta_q)], axis=-1)
    rope_k = jnp.concatenate([jnp.sin(theta_k), jnp.cos(theta_k)], axis=-1)
    # src_key_padding_mask: True = keep (matches torch masked_fill(~mask, -inf))
    keep_mask = jnp.ones((B, N), dtype=bool).at[1, N - 2:].set(False)

    # One-time parameter transform, then the fused forward.
    folded = fold_encoder_params(mha_params, ffn_params,
                                 n_heads=n_heads, key_size=key_size)
    fwd = jax.jit(functools.partial(encoder_layer_pallas, n_heads=n_heads,
                                    key_size=key_size, alpha=alpha))
    out = fwd(x, rope_q, rope_k, keep_mask, folded)
    out = jax.block_until_ready(out)

    ref = encoder_layer_ref(x, rope_q, rope_k, keep_mask, mha_params, ffn_params,
                            n_heads=n_heads, key_size=key_size, alpha=alpha)
    err = float(jnp.max(jnp.abs(out - ref)))
    assert jnp.all(jnp.isfinite(out)), "non-finite output"
    # Tolerance budget: all MXU operands are bf16 (per the perf review) and the softmax
    # denominator uses the EUP approximate reciprocal; typical max deviation vs the f32
    # reference is O(1e-2) after the two LayerNorms, so 5e-2 gives ~2x headroom.
    assert err < 5e-2, f"mismatch vs reference: {err}"

    # TODO(synk): nn.Dropout is modeled as identity (inference); torch checkpoint is a
    # no-op for forward values.
    print("KERNEL_OK")
</pallas_src>

<mosaic_0001>
module attributes {stable_mosaic.version = 11 : i64} {
  func.func @encoder_layer_kernel(%arg0: i32, %arg1: memref<16x32xf32, #tpu.memory_space<vmem>>, %arg2: memref<4x16x24xbf16, #tpu.memory_space<vmem>>, %arg3: memref<2x1x8xf32, #tpu.memory_space<vmem>>, %arg4: memref<32x48xbf16, #tpu.memory_space<vmem>>, %arg5: memref<1x48xf32, #tpu.memory_space<vmem>>, %arg6: memref<32x48xbf16, #tpu.memory_space<vmem>>, %arg7: memref<1x48xf32, #tpu.memory_space<vmem>>, %arg8: memref<32x48xbf16, #tpu.memory_space<vmem>>, %arg9: memref<1x48xf32, #tpu.memory_space<vmem>>, %arg10: memref<48x32xbf16, #tpu.memory_space<vmem>>, %arg11: memref<1x32xf32, #tpu.memory_space<vmem>>, %arg12: memref<2x32xf32, #tpu.memory_space<vmem>>, %arg13: memref<32x256xbf16, #tpu.memory_space<vmem>>, %arg14: memref<128x32xbf16, #tpu.memory_space<vmem>>, %arg15: memref<2x32xf32, #tpu.memory_space<vmem>>, %arg16: memref<16x32xf32, #tpu.memory_space<vmem>>, %arg17: memref<16x48xf32, #tpu.memory_space<vmem>>) attributes {dimension_semantics = [#tpu.dimension_semantics<parallel>], iteration_bounds = array<i64: 1>, scalar_prefetch = 0 : i64, scratch_operands = 1 : i64, tpu.core_type = #tpu.core_type<tc>, window_params = [{transform_indices = @transform_0, window_bounds = array<i64: 16, 32>}, {transform_indices = @transform_1, window_bounds = array<i64: 4, 16, 24>}, {transform_indices = @transform_2, window_bounds = array<i64: 2, 1, 8>}, {pipeline_mode = #tpu.pipeline_mode<synchronous>, transform_indices = @transform_3, window_bounds = array<i64: 32, 48>}, {pipeline_mode = #tpu.pipeline_mode<synchronous>, transform_indices = @transform_4, window_bounds = array<i64: 1, 48>}, {pipeline_mode = #tpu.pipeline_mode<synchronous>, transform_indices = @transform_5, window_bounds = array<i64: 32, 48>}, {pipeline_mode = #tpu.pipeline_mode<synchronous>, transform_indices = @transform_6, window_bounds = array<i64: 1, 48>}, {pipeline_mode = #tpu.pipeline_mode<synchronous>, transform_indices = @transform_7, window_bounds = array<i64: 32, 48>}, {pipeline_mode = #tpu.pipeline_mode<synchronous>, transform_indices = @transform_8, window_bounds = array<i64: 1, 48>}, {pipeline_mode = #tpu.pipeline_mode<synchronous>, transform_indices = @transform_9, window_bounds = array<i64: 48, 32>}, {pipeline_mode = #tpu.pipeline_mode<synchronous>, transform_indices = @transform_10, window_bounds = array<i64: 1, 32>}, {pipeline_mode = #tpu.pipeline_mode<synchronous>, transform_indices = @transform_11, window_bounds = array<i64: 2, 32>}, {pipeline_mode = #tpu.pipeline_mode<synchronous>, transform_indices = @transform_12, window_bounds = array<i64: 32, 256>}, {pipeline_mode = #tpu.pipeline_mode<synchronous>, transform_indices = @transform_13, window_bounds = array<i64: 128, 32>}, {pipeline_mode = #tpu.pipeline_mode<synchronous>, transform_indices = @transform_14, window_bounds = array<i64: 2, 32>}, {transform_indices = @transform_15, window_bounds = array<i64: 16, 32>}]} {
    %c0 = arith.constant 0 : index
    %c0_0 = arith.constant 0 : index
    %0 = vector.load %arg1[%c0, %c0_0] : memref<16x32xf32, #tpu.memory_space<vmem>>, vector<16x32xf32>
    %1 = arith.truncf %0 : vector<16x32xf32> to vector<16x32xbf16>
    %c0_1 = arith.constant 0 : index
    %c0_2 = arith.constant 0 : index
    %2 = vector.load %arg4[%c0_1, %c0_2] : memref<32x48xbf16, #tpu.memory_space<vmem>>, vector<32x48xbf16>
    %cst = arith.constant dense<0.000000e+00> : vector<16x48xf32>
    %3 = tpu.matmul %1, %2, %cst {dimension_numbers = #tpu.dot_dimension_numbers<[1], [0], [0], [1], [0, 0, 1, 1], [], []>} : vector<16x32xbf16>, vector<32x48xbf16>, vector<16x48xf32> -> vector<16x48xf32>
    %c0_3 = arith.constant 0 : index
    %c0_4 = arith.constant 0 : index
    %4 = vector.load %arg5[%c0_3, %c0_4] : memref<1x48xf32, #tpu.memory_space<vmem>>, vector<1x48xf32>
    %5 = vector.broadcast %4 : vector<1x48xf32> to vector<16x48xf32>
    %6 = arith.addf %3, %5 : vector<16x48xf32>
    %c0_5 = arith.constant 0 : index
    %c0_6 = arith.constant 0 : index
    %7 = vector.load %arg6[%c0_5, %c0_6] : memref<32x48xbf16, #tpu.memory_space<vmem>>, vector<32x48xbf16>
    %cst_7 = arith.constant dense<0.000000e+00> : vector<16x48xf32>
    %8 = tpu.matmul %1, %7, %cst_7 {dimension_numbers = #tpu.dot_dimension_numbers<[1], [0], [0], [1], [0, 0, 1, 1], [], []>} : vector<16x32xbf16>, vector<32x48xbf16>, vector<16x48xf32> -> vector<16x48xf32>
    %c0_8 = arith.constant 0 : index
    %c0_9 = arith.constant 0 : index
    %9 = vector.load %arg7[%c0_8, %c0_9] : memref<1x48xf32, #tpu.memory_space<vmem>>, vector<1x48xf32>
    %10 = vector.broadcast %9 : vector<1x48xf32> to vector<16x48xf32>
    %11 = arith.addf %8, %10 : vector<16x48xf32>
    %c0_10 = arith.constant 0 : index
    %c0_11 = arith.constant 0 : index
    %12 = vector.load %arg8[%c0_10, %c0_11] : memref<32x48xbf16, #tpu.memory_space<vmem>>, vector<32x48xbf16>
    %cst_12 = arith.constant dense<0.000000e+00> : vector<16x48xf32>
    %13 = tpu.matmul %1, %12, %cst_12 {dimension_numbers = #tpu.dot_dimension_numbers<[1], [0], [0], [1], [0, 0, 1, 1], [], []>} : vector<16x32xbf16>, vector<32x48xbf16>, vector<16x48xf32> -> vector<16x48xf32>
    %c0_13 = arith.constant 0 : index
    %c0_14 = arith.constant 0 : index
    %14 = vector.load %arg9[%c0_13, %c0_14] : memref<1x48xf32, #tpu.memory_space<vmem>>, vector<1x48xf32>
    %15 = vector.broadcast %14 : vector<1x48xf32> to vector<16x48xf32>
    %16 = arith.addf %13, %15 : vector<16x48xf32>
    %17 = arith.truncf %16 : vector<16x48xf32> to vector<16x48xbf16>
    %c0_15 = arith.constant 0 : index
    %c0_16 = arith.constant 0 : index
    %c0_17 = arith.constant 0 : index
    %18 = vector.load %arg2[%c0_15, %c0_16, %c0_17] : memref<4x16x24xbf16, #tpu.memory_space<vmem>>, vector<1x16x24xbf16>
    %19 = vector.shape_cast %18 : vector<1x16x24xbf16> to vector<16x24xbf16>
    %c1 = arith.constant 1 : index
    %c0_18 = arith.constant 0 : index
    %c0_19 = arith.constant 0 : index
    %20 = vector.load %arg2[%c1, %c0_18, %c0_19] : memref<4x16x24xbf16, #tpu.memory_space<vmem>>, vector<1x16x24xbf16>
    %21 = vector.shape_cast %20 : vector<1x16x24xbf16> to vector<16x24xbf16>
    %c2 = arith.constant 2 : index
    %c0_20 = arith.constant 0 : index
    %c0_21 = arith.constant 0 : index
    %22 = vector.load %arg2[%c2, %c0_20, %c0_21] : memref<4x16x24xbf16, #tpu.memory_space<vmem>>, vector<1x16x24xbf16>
    %23 = vector.shape_cast %22 : vector<1x16x24xbf16> to vector<16x24xbf16>
    %c3 = arith.constant 3 : index
    %c0_22 = arith.constant 0 : index
    %c0_23 = arith.constant 0 : index
    %24 = vector.load %arg2[%c3, %c0_22, %c0_23] : memref<4x16x24xbf16, #tpu.memory_space<vmem>>, vector<1x16x24xbf16>
    %25 = vector.shape_cast %24 : vector<1x16x24xbf16> to vector<16x24xbf16>
    %c0_24 = arith.constant 0 : index
    %c0_25 = arith.constant 0 : index
    %c0_26 = arith.constant 0 : index
    %26 = vector.load %arg3[%c0_24, %c0_25, %c0_26] : memref<2x1x8xf32, #tpu.memory_space<vmem>>, vector<1x1x8xf32>
    %27 = vector.shape_cast %26 : vector<1x1x8xf32> to vector<1x8xf32>
    %28 = vector.shape_cast %27 : vector<1x8xf32> to vector<1x8xf32>
    %29 = vector.broadcast %28 : vector<1x8xf32> to vector<8x8xf32>
    %30 = vector.extract_strided_slice %19 {offsets = [0, 0], sizes = [8, 8], strides = [1, 1]} : vector<16x24xbf16> to vector<8x8xbf16>
    %31 = arith.extf %30 : vector<8x8xbf16> to vector<8x8xf32>
    %32 = vector.extract_strided_slice %21 {offsets = [0, 0], sizes = [8, 8], strides = [1, 1]} : vector<16x24xbf16> to vector<8x8xbf16>
    %33 = arith.extf %32 : vector<8x8xbf16> to vector<8x8xf32>
    %34 = vector.extract_strided_slice %6 {offsets = [0, 0], sizes = [8, 8], strides = [1, 1]} : vector<16x48xf32> to vector<8x8xf32>
    %35 = vector.extract_strided_slice %6 {offsets = [0, 8], sizes = [8, 8], strides = [1, 1]} : vector<16x48xf32> to vector<8x8xf32>
    %36 = arith.mulf %34, %31 : vector<8x8xf32>
    %37 = arith.mulf %35, %33 : vector<8x8xf32>
    %38 = arith.subf %36, %37 : vector<8x8xf32>
    %39 = arith.mulf %35, %31 : vector<8x8xf32>
    %40 = arith.mulf %34, %33 : vector<8x8xf32>
    %41 = arith.addf %39, %40 : vector<8x8xf32>
    %42 = tpu.concatenate %38, %41 in 1 : vector<8x8xf32>, vector<8x8xf32> -> vector<8x16xf32>
    %43 = arith.truncf %42 : vector<8x16xf32> to vector<8x16xbf16>
    %44 = vector.extract_strided_slice %23 {offsets = [0, 0], sizes = [8, 8], strides = [1, 1]} : vector<16x24xbf16> to vector<8x8xbf16>
    %45 = arith.extf %44 : vector<8x8xbf16> to vector<8x8xf32>
    %46 = vector.extract_strided_slice %25 {offsets = [0, 0], sizes = [8, 8], strides = [1, 1]} : vector<16x24xbf16> to vector<8x8xbf16>
    %47 = arith.extf %46 : vector<8x8xbf16> to vector<8x8xf32>
    %48 = vector.extract_strided_slice %11 {offsets = [0, 0], sizes = [8, 8], strides = [1, 1]} : vector<16x48xf32> to vector<8x8xf32>
    %49 = vector.extract_strided_slice %11 {offsets = [0, 8], sizes = [8, 8], strides = [1, 1]} : vector<16x48xf32> to vector<8x8xf32>
    %50 = arith.mulf %48, %45 : vector<8x8xf32>
    %51 = arith.mulf %49, %47 : vector<8x8xf32>
    %52 = arith.subf %50, %51 : vector<8x8xf32>
    %53 = arith.mulf %49, %45 : vector<8x8xf32>
    %54 = arith.mulf %48, %47 : vector<8x8xf32>
    %55 = arith.addf %53, %54 : vector<8x8xf32>
    %56 = tpu.concatenate %52, %55 in 1 : vector<8x8xf32>, vector<8x8xf32> -> vector<8x16xf32>
    %57 = arith.truncf %56 : vector<8x16xf32> to vector<8x16xbf16>
    "tpu.trace_start"() <{level = 10 : i32, message = "nd,md->nm"}> : () -> ()
    %cst_27 = arith.constant dense<0.000000e+00> : vector<8x8xf32>
    %58 = tpu.matmul %43, %57, %cst_27 {dimension_numbers = #tpu.dot_dimension_numbers<[1], [1], [0], [0], [0, 0, 1, 0], [], []>} : vector<8x16xbf16>, vector<8x16xbf16>, vector<8x8xf32> -> vector<8x8xf32>
    "tpu.trace_stop"() : () -> ()
    %59 = arith.addf %58, %29 : vector<8x8xf32>
    %cst_28 = arith.constant dense<0xFF800000> : vector<8xf32>
    %60 = vector.multi_reduction <maximumf>, %59, %cst_28 [1] : vector<8x8xf32> to vector<8xf32>
    %61 = vector.shape_cast %60 : vector<8xf32> to vector<8x1xf32>
    %62 = vector.broadcast %61 : vector<8x1xf32> to vector<8x8xf32>
    %63 = arith.subf %59, %62 : vector<8x8xf32>
    %64 = math.exp %63 : vector<8x8xf32>
    %cst_29 = arith.constant dense<0.000000e+00> : vector<8xf32>
    %65 = vector.multi_reduction <add>, %64, %cst_29 [1] : vector<8x8xf32> to vector<8xf32>
    %66 = vector.shape_cast %65 : vector<8xf32> to vector<8x1xf32>
    %67 = tpu.reciprocal %66 {approx = true} : vector<8x1xf32> -> vector<8x1xf32>
    %68 = vector.broadcast %67 : vector<8x1xf32> to vector<8x8xf32>
    %69 = arith.mulf %64, %68 : vector<8x8xf32>
    %70 = arith.truncf %69 : vector<8x8xf32> to vector<8x8xbf16>
    %71 = vector.extract_strided_slice %17 {offsets = [0, 0], sizes = [8, 16], strides = [1, 1]} : vector<16x48xbf16> to vector<8x16xbf16>
    %cst_30 = arith.constant dense<0.000000e+00> : vector<8x16xf32>
    %72 = tpu.matmul %70, %71, %cst_30 {dimension_numbers = #tpu.dot_dimension_numbers<[1], [0], [0], [1], [0, 0, 1, 1], [], []>} : vector<8x8xbf16>, vector<8x16xbf16>, vector<8x16xf32> -> vector<8x16xf32>
    %c0_31 = arith.constant 0 : index
    %c0_32 = arith.constant 0 : index
    %73 = vector.load %arg17[%c0_31, %c0_32] : memref<16x48xf32, #tpu.memory_space<vmem>>, vector<8x16xf32>
    tpu.vector_store %arg17[%c0_31, %c0_32], %72 {strides = array<i32>} : memref<16x48xf32, #tpu.memory_space<vmem>>, vector<8x16xf32>,
    %74 = vector.extract_strided_slice %19 {offsets = [0, 8], sizes = [8, 8], strides = [1, 1]} : vector<16x24xbf16> to vector<8x8xbf16>
    %75 = arith.extf %74 : vector<8x8xbf16> to vector<8x8xf32>
    %76 = vector.extract_strided_slice %21 {offsets = [0, 8], sizes = [8, 8], strides = [1, 1]} : vector<16x24xbf16> to vector<8x8xbf16>
    %77 = arith.extf %76 : vector<8x8xbf16> to vector<8x8xf32>
    %78 = vector.extract_strided_slice %6 {offsets = [0, 16], sizes = [8, 8], strides = [1, 1]} : vector<16x48xf32> to vector<8x8xf32>
    %79 = vector.extract_strided_slice %6 {offsets = [0, 24], sizes = [8, 8], strides = [1, 1]} : vector<16x48xf32> to vector<8x8xf32>
    %80 = arith.mulf %78, %75 : vector<8x8xf32>
    %81 = arith.mulf %79, %77 : vector<8x8xf32>
    %82 = arith.subf %80, %81 : vector<8x8xf32>
    %83 = arith.mulf %79, %75 : vector<8x8xf32>
    %84 = arith.mulf %78, %77 : vector<8x8xf32>
    %85 = arith.addf %83, %84 : vector<8x8xf32>
    %86 = tpu.concatenate %82, %85 in 1 : vector<8x8xf32>, vector<8x8xf32> -> vector<8x16xf32>
    %87 = arith.truncf %86 : vector<8x16xf32> to vector<8x16xbf16>
    %88 = vector.extract_strided_slice %23 {offsets = [0, 8], sizes = [8, 8], strides = [1, 1]} : vector<16x24xbf16> to vector<8x8xbf16>
    %89 = arith.extf %88 : vector<8x8xbf16> to vector<8x8xf32>
    %90 = vector.extract_strided_slice %25 {offsets = [0, 8], sizes = [8, 8], strides = [1, 1]} : vector<16x24xbf16> to vector<8x8xbf16>
    %91 = arith.extf %90 : vector<8x8xbf16> to vector<8x8xf32>
    %92 = vector.extract_strided_slice %11 {offsets = [0, 16], sizes = [8, 8], strides = [1, 1]} : vector<16x48xf32> to vector<8x8xf32>
    %93 = vector.extract_strided_slice %11 {offsets = [0, 24], sizes = [8, 8], strides = [1, 1]} : vector<16x48xf32> to vector<8x8xf32>
    %94 = arith.mulf %92, %89 : vector<8x8xf32>
    %95 = arith.mulf %93, %91 : vector<8x8xf32>
    %96 = arith.subf %94, %95 : vector<8x8xf32>
    %97 = arith.mulf %93, %89 : vector<8x8xf32>
    %98 = arith.mulf %92, %91 : vector<8x8xf32>
    %99 = arith.addf %97, %98 : vector<8x8xf32>
    %100 = tpu.concatenate %96, %99 in 1 : vector<8x8xf32>, vector<8x8xf32> -> vector<8x16xf32>
    %101 = arith.truncf %100 : vector<8x16xf32> to vector<8x16xbf16>
    "tpu.trace_start"() <{level = 10 : i32, message = "nd,md->nm"}> : () -> ()
    %cst_33 = arith.constant dense<0.000000e+00> : vector<8x8xf32>
    %102 = tpu.matmul %87, %101, %cst_33 {dimension_numbers = #tpu.dot_dimension_numbers<[1], [1], [0], [0], [0, 0, 1, 0], [], []>} : vector<8x16xbf16>, vector<8x16xbf16>, vector<8x8xf32> -> vector<8x8xf32>
    "tpu.trace_stop"() : () -> ()
    %103 = arith.addf %102, %29 : vector<8x8xf32>
    %cst_34 = arith.constant dense<0xFF800000> : vector<8xf32>
    %104 = vector.multi_reduction <maximumf>, %103, %cst_34 [1] : vector<8x8xf32> to vector<8xf32>
    %105 = vector.shape_cast %104 : vector<8xf32> to vector<8x1xf32>
    %106 = vector.broadcast %105 : vector<8x1xf32> to vector<8x8xf32>
    %107 = arith.subf %103, %106 : vector<8x8xf32>
    %108 = math.exp %107 : vector<8x8xf32>
    %cst_35 = arith.constant dense<0.000000e+00> : vector<8xf32>
    %109 = vector.multi_reduction <add>, %108, %cst_35 [1] : vector<8x8xf32> to vector<8xf32>
    %110 = vector.shape_cast %109 : vector<8xf32> to vector<8x1xf32>
    %111 = tpu.reciprocal %110 {approx = true} : vector<8x1xf32> -> vector<8x1xf32>
    %112 = vector.broadcast %111 : vector<8x1xf32> to vector<8x8xf32>
    %113 = arith.mulf %108, %112 : vector<8x8xf32>
    %114 = arith.truncf %113 : vector<8x8xf32> to vector<8x8xbf16>
    %115 = vector.extract_strided_slice %17 {offsets = [0, 16], sizes = [8, 16], strides = [1, 1]} : vector<16x48xbf16> to vector<8x16xbf16>
    %cst_36 = arith.constant dense<0.000000e+00> : vector<8x16xf32>
    %116 = tpu.matmul %114, %115, %cst_36 {dimension_numbers = #tpu.dot_dimension_numbers<[1], [0], [0], [1], [0, 0, 1, 1], [], []>} : vector<8x8xbf16>, vector<8x16xbf16>, vector<8x16xf32> -> vector<8x16xf32>
    %c0_37 = arith.constant 0 : index
    %c16 = arith.constant 16 : index
    %117 = vector.load %arg17[%c0_37, %c16] : memref<16x48xf32, #tpu.memory_space<vmem>>, vector<8x16xf32>
    tpu.vector_store %arg17[%c0_37, %c16], %116 {strides = array<i32>} : memref<16x48xf32, #tpu.memory_space<vmem>>, vector<8x16xf32>,
    %118 = vector.extract_strided_slice %19 {offsets = [0, 16], sizes = [8, 8], strides = [1, 1]} : vector<16x24xbf16> to vector<8x8xbf16>
    %119 = arith.extf %118 : vector<8x8xbf16> to vector<8x8xf32>
    %120 = vector.extract_strided_slice %21 {offsets = [0, 16], sizes = [8, 8], strides = [1, 1]} : vector<16x24xbf16> to vector<8x8xbf16>
    %121 = arith.extf %120 : vector<8x8xbf16> to vector<8x8xf32>
    %122 = vector.extract_strided_slice %6 {offsets = [0, 32], sizes = [8, 8], strides = [1, 1]} : vector<16x48xf32> to vector<8x8xf32>
    %123 = vector.extract_strided_slice %6 {offsets = [0, 40], sizes = [8, 8], strides = [1, 1]} : vector<16x48xf32> to vector<8x8xf32>
    %124 = arith.mulf %122, %119 : vector<8x8xf32>
    %125 = arith.mulf %123, %121 : vector<8x8xf32>
    %126 = arith.subf %124, %125 : vector<8x8xf32>
    %127 = arith.mulf %123, %119 : vector<8x8xf32>
    %128 = arith.mulf %122, %121 : vector<8x8xf32>
    %129 = arith.addf %127, %128 : vector<8x8xf32>
    %130 = tpu.concatenate %126, %129 in 1 : vector<8x8xf32>, vector<8x8xf32> -> vector<8x16xf32>
    %131 = arith.truncf %130 : vector<8x16xf32> to vector<8x16xbf16>
    %132 = vector.extract_strided_slice %23 {offsets = [0, 16], sizes = [8, 8], strides = [1, 1]} : vector<16x24xbf16> to vector<8x8xbf16>
    %133 = arith.extf %132 : vector<8x8xbf16> to vector<8x8xf32>
    %134 = vector.extract_strided_slice %25 {offsets = [0, 16], sizes = [8, 8], strides = [1, 1]} : vector<16x24xbf16> to vector<8x8xbf16>
    %135 = arith.extf %134 : vector<8x8xbf16> to vector<8x8xf32>
    %136 = vector.extract_strided_slice %11 {offsets = [0, 32], sizes = [8, 8], strides = [1, 1]} : vector<16x48xf32> to vector<8x8xf32>
    %137 = vector.extract_strided_slice %11 {offsets = [0, 40], sizes = [8, 8], strides = [1, 1]} : vector<16x48xf32> to vector<8x8xf32>
    %138 = arith.mulf %136, %133 : vector<8x8xf32>
    %139 = arith.mulf %137, %135 : vector<8x8xf32>
    %140 = arith.subf %138, %139 : vector<8x8xf32>
    %141 = arith.mulf %137, %133 : vector<8x8xf32>
    %142 = arith.mulf %136, %135 : vector<8x8xf32>
    %143 = arith.addf %141, %142 : vector<8x8xf32>
    %144 = tpu.concatenate %140, %143 in 1 : vector<8x8xf32>, vector<8x8xf32> -> vector<8x16xf32>
    %145 = arith.truncf %144 : vector<8x16xf32> to vector<8x16xbf16>
    "tpu.trace_start"() <{level = 10 : i32, message = "nd,md->nm"}> : () -> ()
    %cst_38 = arith.constant dense<0.000000e+00> : vector<8x8xf32>
    %146 = tpu.matmul %131, %145, %cst_38 {dimension_numbers = #tpu.dot_dimension_numbers<[1], [1], [0], [0], [0, 0, 1, 0], [], []>} : vector<8x16xbf16>, vector<8x16xbf16>, vector<8x8xf32> -> vector<8x8xf32>
    "tpu.trace_stop"() : () -> ()
    %147 = arith.addf %146, %29 : vector<8x8xf32>
    %cst_39 = arith.constant dense<0xFF800000> : vector<8xf32>
    %148 = vector.multi_reduction <maximumf>, %147, %cst_39 [1] : vector<8x8xf32> to vector<8xf32>
    %149 = vector.shape_cast %148 : vector<8xf32> to vector<8x1xf32>
    %150 = vector.broadcast %149 : vector<8x1xf32> to vector<8x8xf32>
    %151 = arith.subf %147, %150 : vector<8x8xf32>
    %152 = math.exp %151 : vector<8x8xf32>
    %cst_40 = arith.constant dense<0.000000e+00> : vector<8xf32>
    %153 = vector.multi_reduction <add>, %152, %cst_40 [1] : vector<8x8xf32> to vector<8xf32>
    %154 = vector.shape_cast %153 : vector<8xf32> to vector<8x1xf32>
    %155 = tpu.reciprocal %154 {approx = true} : vector<8x1xf32> -> vector<8x1xf32>
    %156 = vector.broadcast %155 : vector<8x1xf32> to vector<8x8xf32>
    %157 = arith.mulf %152, %156 : vector<8x8xf32>
    %158 = arith.truncf %157 : vector<8x8xf32> to vector<8x8xbf16>
    %159 = vector.extract_strided_slice %17 {offsets = [0, 32], sizes = [8, 16], strides = [1, 1]} : vector<16x48xbf16> to vector<8x16xbf16>
    %cst_41 = arith.constant dense<0.000000e+00> : vector<8x16xf32>
    %160 = tpu.matmul %158, %159, %cst_41 {dimension_numbers = #tpu.dot_dimension_numbers<[1], [0], [0], [1], [0, 0, 1, 1], [], []>} : vector<8x8xbf16>, vector<8x16xbf16>, vector<8x16xf32> -> vector<8x16xf32>
    %c0_42 = arith.constant 0 : index
    %c32 = arith.constant 32 : index
    %161 = vector.load %arg17[%c0_42, %c32] : memref<16x48xf32, #tpu.memory_space<vmem>>, vector<8x16xf32>
    tpu.vector_store %arg17[%c0_42, %c32], %160 {strides = array<i32>} : memref<16x48xf32, #tpu.memory_space<vmem>>, vector<8x16xf32>,
    %c1_43 = arith.constant 1 : index
    %c0_44 = arith.constant 0 : index
    %c0_45 = arith.constant 0 : index
    %162 = vector.load %arg3[%c1_43, %c0_44, %c0_45] : memref<2x1x8xf32, #tpu.memory_space<vmem>>, vector<1x1x8xf32>
    %163 = vector.shape_cast %162 : vector<1x1x8xf32> to vector<1x8xf32>
    %164 = vector.shape_cast %163 : vector<1x8xf32> to vector<1x8xf32>
    %165 = vector.broadcast %164 : vector<1x8xf32> to vector<8x8xf32>
    %166 = vector.extract_strided_slice %19 {offsets = [8, 0], sizes = [8, 8], strides = [1, 1]} : vector<16x24xbf16> to vector<8x8xbf16>
    %167 = arith.extf %166 : vector<8x8xbf16> to vector<8x8xf32>
    %168 = vector.extract_strided_slice %21 {offsets = [8, 0], sizes = [8, 8], strides = [1, 1]} : vector<16x24xbf16> to vector<8x8xbf16>
    %169 = arith.extf %168 : vector<8x8xbf16> to vector<8x8xf32>
    %170 = vector.extract_strided_slice %6 {offsets = [8, 0], sizes = [8, 8], strides = [1, 1]} : vector<16x48xf32> to vector<8x8xf32>
    %171 = vector.extract_strided_slice %6 {offsets = [8, 8], sizes = [8, 8], strides = [1, 1]} : vector<16x48xf32> to vector<8x8xf32>
    %172 = arith.mulf %170, %167 : vector<8x8xf32>
    %173 = arith.mulf %171, %169 : vector<8x8xf32>
    %174 = arith.subf %172, %173 : vector<8x8xf32>
    %175 = arith.mulf %171, %167 : vector<8x8xf32>
    %176 = arith.mulf %170, %169 : vector<8x8xf32>
    %177 = arith.addf %175, %176 : vector<8x8xf32>
    %178 = tpu.concatenate %174, %177 in 1 : vector<8x8xf32>, vector<8x8xf32> -> vector<8x16xf32>
    %179 = arith.truncf %178 : vector<8x16xf32> to vector<8x16xbf16>
    %180 = vector.extract_strided_slice %23 {offsets = [8, 0], sizes = [8, 8], strides = [1, 1]} : vector<16x24xbf16> to vector<8x8xbf16>
    %181 = arith.extf %180 : vector<8x8xbf16> to vector<8x8xf32>
    %182 = vector.extract_strided_slice %25 {offsets = [8, 0], sizes = [8, 8], strides = [1, 1]} : vector<16x24xbf16> to vector<8x8xbf16>
    %183 = arith.extf %182 : vector<8x8xbf16> to vector<8x8xf32>
    %184 = vector.extract_strided_slice %11 {offsets = [8, 0], sizes = [8, 8], strides = [1, 1]} : vector<16x48xf32> to vector<8x8xf32>
    %185 = vector.extract_strided_slice %11 {offsets = [8, 8], sizes = [8, 8], strides = [1, 1]} : vector<16x48xf32> to vector<8x8xf32>
    %186 = arith.mulf %184, %181 : vector<8x8xf32>
    %187 = arith.mulf %185, %183 : vector<8x8xf32>
    %188 = arith.subf %186, %187 : vector<8x8xf32>
    %189 = arith.mulf %185, %181 : vector<8x8xf32>
    %190 = arith.mulf %184, %183 : vector<8x8xf32>
    %191 = arith.addf %189, %190 : vector<8x8xf32>
    %192 = tpu.concatenate %188, %191 in 1 : vector<8x8xf32>, vector<8x8xf32> -> vector<8x16xf32>
    %193 = arith.truncf %192 : vector<8x16xf32> to vector<8x16xbf16>
    "tpu.trace_start"() <{level = 10 : i32, message = "nd,md->nm"}> : () -> ()
    %cst_46 = arith.constant dense<0.000000e+00> : vector<8x8xf32>
    %194 = tpu.matmul %179, %193, %cst_46 {dimension_numbers = #tpu.dot_dimension_numbers<[1], [1], [0], [0], [0, 0, 1, 0], [], []>} : vector<8x16xbf16>, vector<8x16xbf16>, vector<8x8xf32> -> vector<8x8xf32>
    "tpu.trace_stop"() : () -> ()
    %195 = arith.addf %194, %165 : vector<8x8xf32>
    %cst_47 = arith.constant dense<0xFF800000> : vector<8xf32>
    %196 = vector.multi_reduction <maximumf>, %195, %cst_47 [1] : vector<8x8xf32> to vector<8xf32>
    %197 = vector.shape_cast %196 : vector<8xf32> to vector<8x1xf32>
    %198 = vector.broadcast %197 : vector<8x1xf32> to vector<8x8xf32>
    %199 = arith.subf %195, %198 : vector<8x8xf32>
    %200 = math.exp %199 : vector<8x8xf32>
    %cst_48 = arith.constant dense<0.000000e+00> : vector<8xf32>
    %201 = vector.multi_reduction <add>, %200, %cst_48 [1] : vector<8x8xf32> to vector<8xf32>
    %202 = vector.shape_cast %201 : vector<8xf32> to vector<8x1xf32>
    %203 = tpu.reciprocal %202 {approx = true} : vector<8x1xf32> -> vector<8x1xf32>
    %204 = vector.broadcast %203 : vector<8x1xf32> to vector<8x8xf32>
    %205 = arith.mulf %200, %204 : vector<8x8xf32>
    %206 = arith.truncf %205 : vector<8x8xf32> to vector<8x8xbf16>
    %207 = vector.extract_strided_slice %17 {offsets = [8, 0], sizes = [8, 16], strides = [1, 1]} : vector<16x48xbf16> to vector<8x16xbf16>
    %cst_49 = arith.constant dense<0.000000e+00> : vector<8x16xf32>
    %208 = tpu.matmul %206, %207, %cst_49 {dimension_numbers = #tpu.dot_dimension_numbers<[1], [0], [0], [1], [0, 0, 1, 1], [], []>} : vector<8x8xbf16>, vector<8x16xbf16>, vector<8x16xf32> -> vector<8x16xf32>
    %c8 = arith.constant 8 : index
    %c0_50 = arith.constant 0 : index
    %209 = vector.load %arg17[%c8, %c0_50] : memref<16x48xf32, #tpu.memory_space<vmem>>, vector<8x16xf32>
    tpu.vector_store %arg17[%c8, %c0_50], %208 {strides = array<i32>} : memref<16x48xf32, #tpu.memory_space<vmem>>, vector<8x16xf32>,
    %210 = vector.extract_strided_slice %19 {offsets = [8, 8], sizes = [8, 8], strides = [1, 1]} : vector<16x24xbf16> to vector<8x8xbf16>
    %211 = arith.extf %210 : vector<8x8xbf16> to vector<8x8xf32>
    %212 = vector.extract_strided_slice %21 {offsets = [8, 8], sizes = [8, 8], strides = [1, 1]} : vector<16x24xbf16> to vector<8x8xbf16>
    %213 = arith.extf %212 : vector<8x8xbf16> to vector<8x8xf32>
    %214 = vector.extract_strided_slice %6 {offsets = [8, 16], sizes = [8, 8], strides = [1, 1]} : vector<16x48xf32> to vector<8x8xf32>
    %215 = vector.extract_strided_slice %6 {offsets = [8, 24], sizes = [8, 8], strides = [1, 1]} : vector<16x48xf32> to vector<8x8xf32>
    %216 = arith.mulf %214, %211 : vector<8x8xf32>
    %217 = arith.mulf %215, %213 : vector<8x8xf32>
    %218 = arith.subf %216, %217 : vector<8x8xf32>
    %219 = arith.mulf %215, %211 : vector<8x8xf32>
    %220 = arith.mulf %214, %213 : vector<8x8xf32>
    %221 = arith.addf %219, %220 : vector<8x8xf32>
    %222 = tpu.concatenate %218, %221 in 1 : vector<8x8xf32>, vector<8x8xf32> -> vector<8x16xf32>
    %223 = arith.truncf %222 : vector<8x16xf32> to vector<8x16xbf16>
    %224 = vector.extract_strided_slice %23 {offsets = [8, 8], sizes = [8, 8], strides = [1, 1]} : vector<16x24xbf16> to vector<8x8xbf16>
    %225 = arith.extf %224 : vector<8x8xbf16> to vector<8x8xf32>
    %226 = vector.extract_strided_slice %25 {offsets = [8, 8], sizes = [8, 8], strides = [1, 1]} : vector<16x24xbf16> to vector<8x8xbf16>
    %227 = arith.extf %226 : vector<8x8xbf16> to vector<8x8xf32>
    %228 = vector.extract_strided_slice %11 {offsets = [8, 16], sizes = [8, 8], strides = [1, 1]} : vector<16x48xf32> to vector<8x8xf32>
    %229 = vector.extract_strided_slice %11 {offsets = [8, 24], sizes = [8, 8], strides = [1, 1]} : vector<16x48xf32> to vector<8x8xf32>
    %230 = arith.mulf %228, %225 : vector<8x8xf32>
    %231 = arith.mulf %229, %227 : vector<8x8xf32>
    %232 = arith.subf %230, %231 : vector<8x8xf32>
    %233 = arith.mulf %229, %225 : vector<8x8xf32>
    %234 = arith.mulf %228, %227 : vector<8x8xf32>
    %235 = arith.addf %233, %234 : vector<8x8xf32>
    %236 = tpu.concatenate %232, %235 in 1 : vector<8x8xf32>, vector<8x8xf32> -> vector<8x16xf32>
    %237 = arith.truncf %236 : vector<8x16xf32> to vector<8x16xbf16>
    "tpu.trace_start"() <{level = 10 : i32, message = "nd,md->nm"}> : () -> ()
    %cst_51 = arith.constant dense<0.000000e+00> : vector<8x8xf32>
    %238 = tpu.matmul %223, %237, %cst_51 {dimension_numbers = #tpu.dot_dimension_numbers<[1], [1], [0], [0], [0, 0, 1, 0], [], []>} : vector<8x16xbf16>, vector<8x16xbf16>, vector<8x8xf32> -> vector<8x8xf32>
    "tpu.trace_stop"() : () -> ()
    %239 = arith.addf %238, %165 : vector<8x8xf32>
    %cst_52 = arith.constant dense<0xFF800000> : vector<8xf32>
    %240 = vector.multi_reduction <maximumf>, %239, %cst_52 [1] : vector<8x8xf32> to vector<8xf32>
    %241 = vector.shape_cast %240 : vector<8xf32> to vector<8x1xf32>
    %242 = vector.broadcast %241 : vector<8x1xf32> to vector<8x8xf32>
    %243 = arith.subf %239, %242 : vector<8x8xf32>
    %244 = math.exp %243 : vector<8x8xf32>
    %cst_53 = arith.constant dense<0.000000e+00> : vector<8xf32>
    %245 = vector.multi_reduction <add>, %244, %cst_53 [1] : vector<8x8xf32> to vector<8xf32>
    %246 = vector.shape_cast %245 : vector<8xf32> to vector<8x1xf32>
    %247 = tpu.reciprocal %246 {approx = true} : vector<8x1xf32> -> vector<8x1xf32>
    %248 = vector.broadcast %247 : vector<8x1xf32> to vector<8x8xf32>
    %249 = arith.mulf %244, %248 : vector<8x8xf32>
    %250 = arith.truncf %249 : vector<8x8xf32> to vector<8x8xbf16>
    %251 = vector.extract_strided_slice %17 {offsets = [8, 16], sizes = [8, 16], strides = [1, 1]} : vector<16x48xbf16> to vector<8x16xbf16>
    %cst_54 = arith.constant dense<0.000000e+00> : vector<8x16xf32>
    %252 = tpu.matmul %250, %251, %cst_54 {dimension_numbers = #tpu.dot_dimension_numbers<[1], [0], [0], [1], [0, 0, 1, 1], [], []>} : vector<8x8xbf16>, vector<8x16xbf16>, vector<8x16xf32> -> vector<8x16xf32>
    %c8_55 = arith.constant 8 : index
    %c16_56 = arith.constant 16 : index
    %253 = vector.load %arg17[%c8_55, %c16_56] : memref<16x48xf32, #tpu.memory_space<vmem>>, vector<8x16xf32>
    tpu.vector_store %arg17[%c8_55, %c16_56], %252 {strides = array<i32>} : memref<16x48xf32, #tpu.memory_space<vmem>>, vector<8x16xf32>,
    %254 = vector.extract_strided_slice %19 {offsets = [8, 16], sizes = [8, 8], strides = [1, 1]} : vector<16x24xbf16> to vector<8x8xbf16>
    %255 = arith.extf %254 : vector<8x8xbf16> to vector<8x8xf32>
    %256 = vector.extract_strided_slice %21 {offsets = [8, 16], sizes = [8, 8], strides = [1, 1]} : vector<16x24xbf16> to vector<8x8xbf16>
    %257 = arith.extf %256 : vector<8x8xbf16> to vector<8x8xf32>
    %258 = vector.extract_strided_slice %6 {offsets = [8, 32], sizes = [8, 8], strides = [1, 1]} : vector<16x48xf32> to vector<8x8xf32>
    %259 = vector.extract_strided_slice %6 {offsets = [8, 40], sizes = [8, 8], strides = [1, 1]} : vector<16x48xf32> to vector<8x8xf32>
    %260 = arith.mulf %258, %255 : vector<8x8xf32>
    %261 = arith.mulf %259, %257 : vector<8x8xf32>
    %262 = arith.subf %260, %261 : vector<8x8xf32>
    %263 = arith.mulf %259, %255 : vector<8x8xf32>
    %264 = arith.mulf %258, %257 : vector<8x8xf32>
    %265 = arith.addf %263, %264 : vector<8x8xf32>
    %266 = tpu.concatenate %262, %265 in 1 : vector<8x8xf32>, vector<8x8xf32> -> vector<8x16xf32>
    %267 = arith.truncf %266 : vector<8x16xf32> to vector<8x16xbf16>
    %268 = vector.extract_strided_slice %23 {offsets = [8, 16], sizes = [8, 8], strides = [1, 1]} : vector<16x24xbf16> to vector<8x8xbf16>
    %269 = arith.extf %268 : vector<8x8xbf16> to vector<8x8xf32>
    %270 = vector.extract_strided_slice %25 {offsets = [8, 16], sizes = [8, 8], strides = [1, 1]} : vector<16x24xbf16> to vector<8x8xbf16>
    %271 = arith.extf %270 : vector<8x8xbf16> to vector<8x8xf32>
    %272 = vector.extract_strided_slice %11 {offsets = [8, 32], sizes = [8, 8], strides = [1, 1]} : vector<16x48xf32> to vector<8x8xf32>
    %273 = vector.extract_strided_slice %11 {offsets = [8, 40], sizes = [8, 8], strides = [1, 1]} : vector<16x48xf32> to vector<8x8xf32>
    %274 = arith.mulf %272, %269 : vector<8x8xf32>
    %275 = arith.mulf %273, %271 : vector<8x8xf32>
    %276 = arith.subf %274, %275 : vector<8x8xf32>
    %277 = arith.mulf %273, %269 : vector<8x8xf32>
    %278 = arith.mulf %272, %271 : vector<8x8xf32>
    %279 = arith.addf %277, %278 : vector<8x8xf32>
    %280 = tpu.concatenate %276, %279 in 1 : vector<8x8xf32>, vector<8x8xf32> -> vector<8x16xf32>
    %281 = arith.truncf %280 : vector<8x16xf32> to vector<8x16xbf16>
    "tpu.trace_start"() <{level = 10 : i32, message = "nd,md->nm"}> : () -> ()
    %cst_57 = arith.constant dense<0.000000e+00> : vector<8x8xf32>
    %282 = tpu.matmul %267, %281, %cst_57 {dimension_numbers = #tpu.dot_dimension_numbers<[1], [1], [0], [0], [0, 0, 1, 0], [], []>} : vector<8x16xbf16>, vector<8x16xbf16>, vector<8x8xf32> -> vector<8x8xf32>
    "tpu.trace_stop"() : () -> ()
    %283 = arith.addf %282, %165 : vector<8x8xf32>
    %cst_58 = arith.constant dense<0xFF800000> : vector<8xf32>
    %284 = vector.multi_reduction <maximumf>, %283, %cst_58 [1] : vector<8x8xf32> to vector<8xf32>
    %285 = vector.shape_cast %284 : vector<8xf32> to vector<8x1xf32>
    %286 = vector.broadcast %285 : vector<8x1xf32> to vector<8x8xf32>
    %287 = arith.subf %283, %286 : vector<8x8xf32>
    %288 = math.exp %287 : vector<8x8xf32>
    %cst_59 = arith.constant dense<0.000000e+00> : vector<8xf32>
    %289 = vector.multi_reduction <add>, %288, %cst_59 [1] : vector<8x8xf32> to vector<8xf32>
    %290 = vector.shape_cast %289 : vector<8xf32> to vector<8x1xf32>
    %291 = tpu.reciprocal %290 {approx = true} : vector<8x1xf32> -> vector<8x1xf32>
    %292 = vector.broadcast %291 : vector<8x1xf32> to vector<8x8xf32>
    %293 = arith.mulf %288, %292 : vector<8x8xf32>
    %294 = arith.truncf %293 : vector<8x8xf32> to vector<8x8xbf16>
    %295 = vector.extract_strided_slice %17 {offsets = [8, 32], sizes = [8, 16], strides = [1, 1]} : vector<16x48xbf16> to vector<8x16xbf16>
    %cst_60 = arith.constant dense<0.000000e+00> : vector<8x16xf32>
    %296 = tpu.matmul %294, %295, %cst_60 {dimension_numbers = #tpu.dot_dimension_numbers<[1], [0], [0], [1], [0, 0, 1, 1], [], []>} : vector<8x8xbf16>, vector<8x16xbf16>, vector<8x16xf32> -> vector<8x16xf32>
    %c8_61 = arith.constant 8 : index
    %c32_62 = arith.constant 32 : index
    %297 = vector.load %arg17[%c8_61, %c32_62] : memref<16x48xf32, #tpu.memory_space<vmem>>, vector<8x16xf32>
    tpu.vector_store %arg17[%c8_61, %c32_62], %296 {strides = array<i32>} : memref<16x48xf32, #tpu.memory_space<vmem>>, vector<8x16xf32>,
    %c0_63 = arith.constant 0 : index
    %c0_64 = arith.constant 0 : index
    %298 = vector.load %arg17[%c0_63, %c0_64] : memref<16x48xf32, #tpu.memory_space<vmem>>, vector<16x48xf32>
    %299 = arith.truncf %298 : vector<16x48xf32> to vector<16x48xbf16>
    %c0_65 = arith.constant 0 : index
    %c0_66 = arith.constant 0 : index
    %300 = vector.load %arg10[%c0_65, %c0_66] : memref<48x32xbf16, #tpu.memory_space<vmem>>, vector<48x32xbf16>
    %cst_67 = arith.constant dense<0.000000e+00> : vector<16x32xf32>
    %301 = tpu.matmul %299, %300, %cst_67 {dimension_numbers = #tpu.dot_dimension_numbers<[1], [0], [0], [1], [0, 0, 1, 1], [], []>} : vector<16x48xbf16>, vector<48x32xbf16>, vector<16x32xf32> -> vector<16x32xf32>
    %c0_68 = arith.constant 0 : index
    %c0_69 = arith.constant 0 : index
    %302 = vector.load %arg11[%c0_68, %c0_69] : memref<1x32xf32, #tpu.memory_space<vmem>>, vector<1x32xf32>
    %303 = vector.broadcast %302 : vector<1x32xf32> to vector<16x32xf32>
    %304 = arith.addf %301, %303 : vector<16x32xf32>
    %c0_70 = arith.constant 0 : index
    %c0_71 = arith.constant 0 : index
    %305 = vector.load %arg12[%c0_70, %c0_71] : memref<2x32xf32, #tpu.memory_space<vmem>>, vector<2x32xf32>
    %cst_72 = arith.constant 1.86120975 : f32
    %306 = vector.broadcast %cst_72 : f32 to vector<16x32xf32>
    %307 = arith.mulf %0, %306 : vector<16x32xf32>
    %308 = arith.addf %307, %304 : vector<16x32xf32>
    %cst_73 = arith.constant dense<0.000000e+00> : vector<16xf32>
    %309 = vector.multi_reduction <add>, %308, %cst_73 [1] : vector<16x32xf32> to vector<16xf32>
    %310 = vector.shape_cast %309 : vector<16xf32> to vector<16x1xf32>
    %cst_74 = arith.constant 3.200000e+01 : f32
    %311 = vector.broadcast %cst_74 : f32 to vector<16x1xf32>
    %312 = arith.divf %310, %311 : vector<16x1xf32>
    %313 = arith.mulf %308, %308 : vector<16x32xf32>
    %cst_75 = arith.constant dense<0.000000e+00> : vector<16xf32>
    %314 = vector.multi_reduction <add>, %313, %cst_75 [1] : vector<16x32xf32> to vector<16xf32>
    %315 = vector.shape_cast %314 : vector<16xf32> to vector<16x1xf32>
    %cst_76 = arith.constant 3.200000e+01 : f32
    %316 = vector.broadcast %cst_76 : f32 to vector<16x1xf32>
    %317 = arith.divf %315, %316 : vector<16x1xf32>
    %318 = arith.mulf %312, %312 : vector<16x1xf32>
    %319 = arith.subf %317, %318 : vector<16x1xf32>
    %320 = vector.broadcast %312 : vector<16x1xf32> to vector<16x32xf32>
    %321 = arith.subf %308, %320 : vector<16x32xf32>
    %cst_77 = arith.constant 9.99999974E-6 : f32
    %322 = vector.broadcast %cst_77 : f32 to vector<16x1xf32>
    %323 = arith.addf %319, %322 : vector<16x1xf32>
    %324 = math.rsqrt %323 : vector<16x1xf32>
    %325 = vector.broadcast %324 : vector<16x1xf32> to vector<16x32xf32>
    %326 = arith.mulf %321, %325 : vector<16x32xf32>
    %327 = vector.extract_strided_slice %305 {offsets = [0, 0], sizes = [1, 32], strides = [1, 1]} : vector<2x32xf32> to vector<1x32xf32>
    %328 = vector.broadcast %327 : vector<1x32xf32> to vector<16x32xf32>
    %329 = arith.mulf %326, %328 : vector<16x32xf32>
    %330 = vector.extract_strided_slice %305 {offsets = [1, 0], sizes = [1, 32], strides = [1, 1]} : vector<2x32xf32> to vector<1x32xf32>
    %331 = vector.broadcast %330 : vector<1x32xf32> to vector<16x32xf32>
    %332 = arith.addf %329, %331 : vector<16x32xf32>
    %333 = arith.truncf %332 : vector<16x32xf32> to vector<16x32xbf16>
    %c0_78 = arith.constant 0 : index
    %c0_79 = arith.constant 0 : index
    %334 = vector.load %arg13[%c0_78, %c0_79] : memref<32x256xbf16, #tpu.memory_space<vmem>>, vector<32x256xbf16>
    %cst_80 = arith.constant dense<0.000000e+00> : vector<16x256xf32>
    %335 = tpu.matmul %333, %334, %cst_80 {dimension_numbers = #tpu.dot_dimension_numbers<[1], [0], [0], [1], [0, 0, 1, 1], [], []>} : vector<16x32xbf16>, vector<32x256xbf16>, vector<16x256xf32> -> vector<16x256xf32>
    %336 = vector.extract_strided_slice %335 {offsets = [0, 0], sizes = [16, 128], strides = [1, 1]} : vector<16x256xf32> to vector<16x128xf32>
    %cst_81 = arith.constant 0.000000e+00 : f32
    %337 = vector.broadcast %cst_81 : f32 to vector<16x128xf32>
    %338 = arith.maximumf %336, %337 : vector<16x128xf32>
    %339 = vector.extract_strided_slice %335 {offsets = [0, 128], sizes = [16, 128], strides = [1, 1]} : vector<16x256xf32> to vector<16x128xf32>
    %340 = arith.mulf %338, %339 : vector<16x128xf32>
    %341 = arith.truncf %340 : vector<16x128xf32> to vector<16x128xbf16>
    %c0_82 = arith.constant 0 : index
    %c0_83 = arith.constant 0 : index
    %342 = vector.load %arg14[%c0_82, %c0_83] : memref<128x32xbf16, #tpu.memory_space<vmem>>, vector<128x32xbf16>
    %cst_84 = arith.constant dense<0.000000e+00> : vector<16x32xf32>
    %343 = tpu.matmul %341, %342, %cst_84 {dimension_numbers = #tpu.dot_dimension_numbers<[1], [0], [0], [1], [0, 0, 1, 1], [], []>} : vector<16x128xbf16>, vector<128x32xbf16>, vector<16x32xf32> -> vector<16x32xf32>
    %c0_85 = arith.constant 0 : index
    %c0_86 = arith.constant 0 : index
    %344 = vector.load %arg15[%c0_85, %c0_86] : memref<2x32xf32, #tpu.memory_space<vmem>>, vector<2x32xf32>
    %cst_87 = arith.constant 1.86120975 : f32
    %345 = vector.broadcast %cst_87 : f32 to vector<16x32xf32>
    %346 = arith.mulf %332, %345 : vector<16x32xf32>
    %347 = arith.addf %346, %343 : vector<16x32xf32>
    %cst_88 = arith.constant dense<0.000000e+00> : vector<16xf32>
    %348 = vector.multi_reduction <add>, %347, %cst_88 [1] : vector<16x32xf32> to vector<16xf32>
    %349 = vector.shape_cast %348 : vector<16xf32> to vector<16x1xf32>
    %cst_89 = arith.constant 3.200000e+01 : f32
    %350 = vector.broadcast %cst_89 : f32 to vector<16x1xf32>
    %351 = arith.divf %349, %350 : vector<16x1xf32>
    %352 = arith.mulf %347, %347 : vector<16x32xf32>
    %cst_90 = arith.constant dense<0.000000e+00> : vector<16xf32>
    %353 = vector.multi_reduction <add>, %352, %cst_90 [1] : vector<16x32xf32> to vector<16xf32>
    %354 = vector.shape_cast %353 : vector<16xf32> to vector<16x1xf32>
    %cst_91 = arith.constant 3.200000e+01 : f32
    %355 = vector.broadcast %cst_91 : f32 to vector<16x1xf32>
    %356 = arith.divf %354, %355 : vector<16x1xf32>
    %357 = arith.mulf %351, %351 : vector<16x1xf32>
    %358 = arith.subf %356, %357 : vector<16x1xf32>
    %359 = vector.broadcast %351 : vector<16x1xf32> to vector<16x32xf32>
    %360 = arith.subf %347, %359 : vector<16x32xf32>
    %cst_92 = arith.constant 9.99999974E-6 : f32
    %361 = vector.broadcast %cst_92 : f32 to vector<16x1xf32>
    %362 = arith.addf %358, %361 : vector<16x1xf32>
    %363 = math.rsqrt %362 : vector<16x1xf32>
    %364 = vector.broadcast %363 : vector<16x1xf32> to vector<16x32xf32>
    %365 = arith.mulf %360, %364 : vector<16x32xf32>
    %366 = vector.extract_strided_slice %344 {offsets = [0, 0], sizes = [1, 32], strides = [1, 1]} : vector<2x32xf32> to vector<1x32xf32>
    %367 = vector.broadcast %366 : vector<1x32xf32> to vector<16x32xf32>
    %368 = arith.mulf %365, %367 : vector<16x32xf32>
    %369 = vector.extract_strided_slice %344 {offsets = [1, 0], sizes = [1, 32], strides = [1, 1]} : vector<2x32xf32> to vector<1x32xf32>
    %370 = vector.broadcast %369 : vector<1x32xf32> to vector<16x32xf32>
    %371 = arith.addf %368, %370 : vector<16x32xf32>
    %c0_93 = arith.constant 0 : index
    %c0_94 = arith.constant 0 : index
    %372 = vector.load %arg16[%c0_93, %c0_94] : memref<16x32xf32, #tpu.memory_space<vmem>>, vector<16x32xf32>
    tpu.vector_store %arg16[%c0_93, %c0_94], %371 {strides = array<i32>} : memref<16x32xf32, #tpu.memory_space<vmem>>, vector<16x32xf32>,
    return
  }
  func.func @transform_0(%arg0: i32) -> (i32, i32) {
    %c0_i32 = arith.constant 0 : i32
    %c0_i32_0 = arith.constant 0 : i32
    return %arg0, %c0_i32 : i32, i32
  }
  func.func @transform_1(%arg0: i32) -> (i32, i32, i32) {
    %c0_i32 = arith.constant 0 : i32
    %c0_i32_0 = arith.constant 0 : i32
    %c0_i32_1 = arith.constant 0 : i32
    return %c0_i32, %arg0, %c0_i32_0 : i32, i32, i32
  }
  func.func @transform_2(%arg0: i32) -> (i32, i32, i32) {
    %c0_i32 = arith.constant 0 : i32
    %c0_i32_0 = arith.constant 0 : i32
    %c0_i32_1 = arith.constant 0 : i32
    return %arg0, %c0_i32, %c0_i32_0 : i32, i32, i32
  }
  func.func @transform_3(%arg0: i32) -> (i32, i32) {
    %c0_i32 = arith.constant 0 : i32
    %c0_i32_0 = arith.constant 0 : i32
    %c0_i32_1 = arith.constant 0 : i32
    return %c0_i32, %c0_i32_0 : i32, i32
  }
  func.func @transform_4(%arg0: i32) -> (i32, i32) {
    %c0_i32 = arith.constant 0 : i32
    %c0_i32_0 = arith.constant 0 : i32
    %c0_i32_1 = arith.constant 0 : i32
    return %c0_i32, %c0_i32_0 : i32, i32
  }
  func.func @transform_5(%arg0: i32) -> (i32, i32) {
    %c0_i32 = arith.constant 0 : i32
    %c0_i32_0 = arith.constant 0 : i32
    %c0_i32_1 = arith.constant 0 : i32
    return %c0_i32, %c0_i32_0 : i32, i32
  }
  func.func @transform_6(%arg0: i32) -> (i32, i32) {
    %c0_i32 = arith.constant 0 : i32
    %c0_i32_0 = arith.constant 0 : i32
    %c0_i32_1 = arith.constant 0 : i32
    return %c0_i32, %c0_i32_0 : i32, i32
  }
  func.func @transform_7(%arg0: i32) -> (i32, i32) {
    %c0_i32 = arith.constant 0 : i32
    %c0_i32_0 = arith.constant 0 : i32
    %c0_i32_1 = arith.constant 0 : i32
    return %c0_i32, %c0_i32_0 : i32, i32
  }
  func.func @transform_8(%arg0: i32) -> (i32, i32) {
    %c0_i32 = arith.constant 0 : i32
    %c0_i32_0 = arith.constant 0 : i32
    %c0_i32_1 = arith.constant 0 : i32
    return %c0_i32, %c0_i32_0 : i32, i32
  }
  func.func @transform_9(%arg0: i32) -> (i32, i32) {
    %c0_i32 = arith.constant 0 : i32
    %c0_i32_0 = arith.constant 0 : i32
    %c0_i32_1 = arith.constant 0 : i32
    return %c0_i32, %c0_i32_0 : i32, i32
  }
  func.func @transform_10(%arg0: i32) -> (i32, i32) {
    %c0_i32 = arith.constant 0 : i32
    %c0_i32_0 = arith.constant 0 : i32
    %c0_i32_1 = arith.constant 0 : i32
    return %c0_i32, %c0_i32_0 : i32, i32
  }
  func.func @transform_11(%arg0: i32) -> (i32, i32) {
    %c0_i32 = arith.constant 0 : i32
    %c0_i32_0 = arith.constant 0 : i32
    %c0_i32_1 = arith.constant 0 : i32
    return %c0_i32, %c0_i32_0 : i32, i32
  }
  func.func @transform_12(%arg0: i32) -> (i32, i32) {
    %c0_i32 = arith.constant 0 : i32
    %c0_i32_0 = arith.constant 0 : i32
    %c0_i32_1 = arith.constant 0 : i32
    return %c0_i32, %c0_i32_0 : i32, i32
  }
  func.func @transform_13(%arg0: i32) -> (i32, i32) {
    %c0_i32 = arith.constant 0 : i32
    %c0_i32_0 = arith.constant 0 : i32
    %c0_i32_1 = arith.constant 0 : i32
    return %c0_i32, %c0_i32_0 : i32, i32
  }
  func.func @transform_14(%arg0: i32) -> (i32, i32) {
    %c0_i32 = arith.constant 0 : i32
    %c0_i32_0 = arith.constant 0 : i32
    %c0_i32_1 = arith.constant 0 : i32
    return %c0_i32, %c0_i32_0 : i32, i32
  }
  func.func @transform_15(%arg0: i32) -> (i32, i32) {
    %c0_i32 = arith.constant 0 : i32
    %c0_i32_0 = arith.constant 0 : i32
    return %arg0, %c0_i32 : i32, i32
  }
}

</mosaic_0001>

<bundles_post_ra>
// kernel: encoder_layer_pallas.1
= control target key start
LH: loop header
LB: loop body
LE: loop exit
PB: predicated region body
PF: predicated region fallthrough
CT: control target
= control target key end

     0   :  { %v2032_v1 = vmov 0.0   ;;  %vm2033_vm0 = vmmov 0   ;;  %vm78_vm1 = vcmask 261120   ;;  %s2035_s18 = smov 16   ;;  %s2036_s19 = smov 24   ;;  %s2583_s0 = inlined_call_operand.vmem [shape: f32[16,32], index: 0, kind: input, shape index: {}]   ;;  %s2584_s1 = inlined_call_operand.vmem [shape: bf16[4,16,24], index: 1, kind: input, shape index: {}]   ;;  %s2585_s2 = inlined_call_operand.vmem [shape: f32[2,1,8], index: 2, kind: input, shape index: {}]   ;;  %s2586_s3 = inlined_call_operand.vmem [shape: bf16[32,48], index: 3, kind: input, shape index: {}]   ;;  %s2587_s4 = inlined_call_operand.vmem [shape: f32[1,48], index: 4, kind: input, shape index: {}]   ;;  %s2588_s5 = inlined_call_operand.vmem [shape: bf16[32,48], index: 5, kind: input, shape index: {}]   ;;  %s2589_s6 = inlined_call_operand.vmem [shape: f32[1,48], index: 6, kind: input, shape index: {}]   ;;  %s2590_s7 = inlined_call_operand.vmem [shape: bf16[32,48], index: 7, kind: input, shape index: {}]   ;;  %s2591_s8 = inlined_call_operand.vmem [shape: f32[1,48], index: 8, kind: input, shape index: {}]   ;;  %s2592_s9 = inlined_call_operand.vmem [shape: bf16[48,32], index: 9, kind: input, shape index: {}]   ;;  %s2593_s10 = inlined_call_operand.vmem [shape: f32[1,32], index: 10, kind: input, shape index: {}]   ;;  %s2594_s11 = inlined_call_operand.vmem [shape: f32[2,32], index: 11, kind: input, shape index: {}]   ;;  %s2595_s12 = inlined_call_operand.vmem [shape: bf16[32,256], index: 12, kind: input, shape index: {}]   ;;  %s2596_s13 = inlined_call_operand.vmem [shape: bf16[128,32], index: 13, kind: input, shape index: {}]   ;;  %s2597_s14 = inlined_call_operand.vmem [shape: f32[2,32], index: 14, kind: input, shape index: {}]   ;;  %s2598_s15 = inlined_call_operand.hbm [shape: f32[16,32], index: 15, kind: output, shape index: {}]  }
   0x1   :  { %v1951_v0 = vld [vmem:[%s2588_s5] sm:$0xff]   ;;  %1756 = vmatprep.subr.bf16.mxu1 %v2032_v1  ;;  %1748 = vmatprep.subr.bf16.mxu0 %v2032_v1  ;;  %v1953_v3 = vld [vmem:[%s2588_s5 + $0x8] sm:$0xff]   ;;  %v1701_v7 = vld [vmem:[%s2584_s1 + $0x18] sm:$0xff]  }
   0x2   :  { %v1952_v2 = vld [vmem:[%s2586_s3] sm:$0xff]   ;;  %1757 = vmatpush3.bf16.msra.mxu1 %v1951_v0  ;;  %1760 = vmatprep.mubr.msk.bf16.mxu1 %vm2033_vm0, %v2032_v1  ;;  %v53_v5 = vld [vmem:[%s2583_s0 + $0x8] sm:$0xff]  ;;  %v2155_v9 = vunpack.c.l.bf16 %v1701_v7  ;;  %v2182_v12 = vunpack.c.h.bf16 %v1701_v7 }
   0x3   :  { %1758 = vmatprep.subr.bf16.mxu1 %v2032_v1  ;;  %1749 = vmatpush3.bf16.msra.mxu0 %v1952_v2  ;;  %v52_v4 = vld [vmem:[%s2583_s0] sm:$0xff]  ;;  %v1954_v6 = vld [vmem:[%s2586_s3 + $0x8] sm:$0xff]   ;;  %s2034_s3 = smov 8  }
   0x4   :  { %1750 = vmatprep.subr.bf16.mxu0 %v2032_v1  ;;  %1752 = vmatprep.mubr.msk.bf16.mxu0 %vm2033_vm0, %v2032_v1  ;;  %v2153_v8 = vpack.c.bf16 %v53_v5, %v52_v4  ;;  %v1699_v10 = vld [vmem:[%s2584_s1 + $0x8] sm:$0xff]  }
   0x5   :  { %v2160_v11 = vunpack.c.l.bf16 %v1699_v10  ;;  %301 = vrot.lane.b32.xlu0 %v2155_v9, %s2034_s3 }
   0x6   :  { %1759 = vmatpush3.bf16.msra.mxu1 %v1953_v3 }
   0x7   :  { %1751 = vmatpush3.bf16.msra.mxu0 %v1954_v6  ;;  %274 = vrot.lane.b32.xlu1 %v2160_v11, %s2034_s3 }
   0x8   :  { %1772 = vmatprep.subr.bf16.mxu1 %v2032_v1  ;;  %1764 = vmatprep.subr.bf16.mxu0 %v2032_v1 }
   0x9   :  { %1761 = vmatmul.mubr.msk.bf16.vlgmr.msra.gmra.mrb[0].mxu1 %vm78_vm1, %v2153_v8  ;;  %457 = vrot.lane.b32.xlu0 %v2155_v9, %s2035_s18 }
   0xa   :  { %1753 = vmatmul.mubr.msk.bf16.vlgmr.msra.gmra.mrb[0].mxu0 %vm78_vm1, %v2153_v8  ;;  %1774 = vmatprep.mubr.msk.bf16.mxu1 %vm2033_vm0, %v2032_v1 }
   0xb   :  { %1768 = vmatprep.mubr.msk.bf16.mxu0 %vm2033_vm0, %v2032_v1  ;;  %430 = vrot.lane.b32.xlu1 %v2160_v11, %s2035_s18 }
   0xd   :  { %624 = vrot.lane.b32.xlu0 %v2155_v9, %s2036_s19 }
   0xf   :  { %597 = vrot.lane.b32.xlu1 %v2160_v11, %s2036_s19 }
  0x10   :  { %20 = vsyncpa [#allocation4], 0  ;;  %v2188_v13 = vunpack.c.h.bf16 %v1699_v10  ;;  %v2195_v14 = vld [vmem:[%s2584_s1] sm:$0xff]   ;;  %v2200_v15 = vld [vmem:[%s2584_s1 + $0x10] sm:$0xff]   ;;  %s2039_s27 = smov 96   ;;  %vm294_vm2 = vcmask 64512  }
  0x11   :  { %801 = vrot.lane.b32.xlu0 %v2182_v12, %s2034_s3  ;;  %v1685_v16 = vunpack.c.l.bf16 %v2195_v14  ;;  %v1693_v17 = vunpack.c.l.bf16 %v2200_v15  ;;  %v1636_v21 = vld [vmem:[%s2589_s6] ss:$0 sm:$0xff]  ;;  %s2037_s6 = smov 120   ;;  %v2239_v41 = vunpack.c.h.bf16 %v2195_v14  ;;  %v2242_v42 = vunpack.c.h.bf16 %v2200_v15 }
  0x12   :  { %v1632_v22 = vld [vmem:[%s2587_s4] ss:$0 sm:$0xff]  ;;  %s2038_s4 = smov 112   ;;  %vm323_vm3 = vcmask 130048   ;;  %vm385_vm4 = vcmask 1043456   ;;  %vm595_vm5 = vcmask 261248  }
  0x13   :  { %956 = vrot.lane.b32.xlu1 %v2182_v12, %s2035_s18  ;;  %v1886_v18 = vpack.i.bf16 %v1685_v16, %v1693_v17  ;;  %v1901_v43 = vpack.i.bf16 %v2239_v41, %v2242_v42  ;;  %vm761_vm6 = vcmask 392448   ;;  %vm1293_vm7 = vcmask 392192  }
  0x15   :  { %775 = vrot.lane.b32.xlu0 %v2188_v13, %s2034_s3 }
  0x17   :  { %929 = vrot.lane.b32.xlu1 %v2188_v13, %s2035_s18 }
  0x19   :  { %1121 = vrot.lane.b32.xlu0 %v2182_v12, %s2036_s19 }
  0x1b   :  { %1094 = vrot.lane.b32.xlu1 %v2188_v13, %s2036_s19 }
  0x1d   :  { %1887 = vrot.lane.b32.xlu0 %v1886_v18, %s2034_s3 }
  0x1f   :  { %1892 = vrot.lane.b32.xlu1 %v1886_v18, %s2035_s18 }
  0x21   :  { %1897 = vrot.lane.b32.xlu0 %v1886_v18, %s2036_s19 }
  0x77   :  { %v302_v19 = vpop.permute.xlu0 %301 }
  0x79   :  { %v275_v20 = vpop.permute.xlu1 %274 }
  0x7b   :  { %v458_v23 = vpop.permute.xlu0 %457 }
  0x7d   :  { %v431_v35 = vpop.permute.xlu1 %430 }
  0x7f   :  { %v625_v39 = vpop.permute.xlu0 %624 }
  0x81   :  { %v598_v44 = vpop.permute.xlu1 %597 }
  0x83   :  { %v802_v45 = vpop.permute.xlu0 %801 }
  0x85   :  { %v957_v48 = vpop.permute.xlu1 %956 }
  0x87   :  { %v776_v51 = vpop.permute.xlu0 %775 }
  0x89   :  { %v930_v52 = vpop.permute.xlu1 %929 }
  0x8b   :  { %v1122_v55 = vpop.permute.xlu0 %1121 }
  0x8d   :  { %v1095_v58 = vpop.permute.xlu1 %1094 }
  0x8f   :  { %v1888_v62 = vpop.permute.xlu0 %1887 }
  0x90   :  { %v1889_v0 = vunpack.i.l.bf16 %v1888_v62  ;;  %v1890_v4 = vunpack.i.h.bf16 %v1888_v62 }
  0x91   :  { %v1893_v63 = vpop.permute.xlu1 %1892 }
  0x92   :  { %v1894_v2 = vunpack.i.l.bf16 %v1893_v63  ;;  %v1895_v5 = vunpack.i.h.bf16 %v1893_v63 }
  0x93   :  { %v1898_v3 = vpop.permute.xlu0 %1897 }
  0xdc   :  { %v180_v24 = vpop.f32.mrb[0].mxu1 }
  0xdd   :  { %v2225_v25 = vadd.f32 %v1636_v21, %v180_v24  ;;  %v1762_v26 = vpop.f32.mrb[1].mxu1  ;;  %v116_v27 = vpop.f32.mrb[0].mxu0 }
  0xde   :  { %v183_v28 = vpop.f32.mrb[2].mxu1  ;;  %v2227_v29 = vadd.f32 %v1632_v22, %v116_v27  ;;  %v1754_v30 = vpop.f32.mrb[1].mxu0 }
  0xdf   :  { %v1763_v31 = vpop.f32.mrb[3].mxu1  ;;  %v460_v32 = vmul.f32 %v458_v23, %v2225_v25  ;;  %v304_v33 = vmul.f32 %v302_v19, %v2225_v25  ;;  %v119_v34 = vpop.f32.mrb[2].mxu0  ;;  %v627_v40 = vmul.f32 %v625_v39, %v2225_v25  ;;  %v2250_v46 = vadd.f32 %v1636_v21, %v183_v28 }
  0xe0   :  { %v1755_v36 = vpop.f32.mrb[3].mxu0  ;;  %v433_v37 = vmul.f32 %v431_v35, %v2227_v29  ;;  %v277_v38 = vmul.f32 %v275_v20, %v2227_v29  ;;  %v600_v47 = vmul.f32 %v598_v44, %v2227_v29  ;;  %v2255_v49 = vadd.f32 %v1632_v22, %v119_v34 }
  0xe1   :  { %462 = vrot.lane.b32.xlu0 %v460_v32, %s2037_s6  ;;  %470 = vrot.lane.b32.xlu1 %v304_v33, %s2034_s3  ;;  %v804_v50 = vmul.f32 %v802_v45, %v2250_v46  ;;  %v959_v53 = vmul.f32 %v957_v48, %v2250_v46  ;;  %v1124_v56 = vmul.f32 %v1122_v55, %v2250_v46  ;;  %v1899_v19 = vunpack.i.l.bf16 %v1898_v3 }
  0xe2   :  { %v932_v54 = vmul.f32 %v930_v52, %v2255_v49  ;;  %v2267_v57 = vmul.f32 %v776_v51, %v2255_v49  ;;  %v1097_v59 = vmul.f32 %v1095_v58, %v2255_v49  ;;  %v315_v60 = vmul.f32 %v2155_v9, %v2225_v25 }
  0xe3   :  { %v288_v61 = vmul.f32 %v2160_v11, %v2227_v29  ;;  %v2287_v6 = vmul.f32 %v1889_v0, %v2225_v25  ;;  %v469_v7 = vmul.f32 %v1894_v2, %v2225_v25  ;;  %v2292_v21 = vmul.f32 %v1890_v4, %v2227_v29 }
  0xe4   :  { %v442_v22 = vmul.f32 %v1895_v5, %v2227_v29  ;;  %v636_v30 = vmul.f32 %v1899_v19, %v2225_v25  ;;  %v1900_v35 = vunpack.i.h.bf16 %v1898_v3  ;;  %v789_v58 = vmul.f32 %v2188_v13, %v2255_v49 }
  0xe5   :  { %435 = vrot.lane.b32.xlu1 %v433_v37, %s2037_s6  ;;  %443 = vrot.lane.b32.xlu0 %v277_v38, %s2034_s3 }
  0xe6   :  { %v609_v39 = vmul.f32 %v1900_v35, %v2227_v29  ;;  %v272_v35 = vmul.f32 %v1685_v16, %v2227_v29 }
  0xe9   :  { %629 = vrot.lane.b32.xlu1 %v627_v40, %s2037_s6  ;;  %637 = vrot.lane.b32.xlu0 %v460_v32, %s2034_s3  ;;  %v815_v40 = vmul.f32 %v2182_v12, %v2250_v46 }
  0xed   :  { %1902 = vrot.lane.b32.xlu1 %v1901_v43, %s2034_s3  ;;  %610 = vrot.lane.b32.xlu0 %v433_v37, %s2034_s3 }
  0xf1   :  { %602 = vrot.lane.b32.xlu1 %v600_v47, %s2037_s6  ;;  %1907 = vrot.lane.b32.xlu0 %v1901_v43, %s2035_s18 }
  0xf5   :  { %1130 = vrot.lane.b32.xlu1 %v2242_v42, %s2036_s19  ;;  %969 = vrot.lane.b32.xlu0 %v804_v50, %s2034_s3 }
  0xf9   :  { %961 = vrot.lane.b32.xlu1 %v959_v53, %s2037_s6  ;;  %934 = vrot.lane.b32.xlu0 %v932_v54, %s2037_s6 }
  0xfd   :  { %1126 = vrot.lane.b32.xlu0 %v1124_v56, %s2037_s6  ;;  %942 = vrot.lane.b32.xlu1 %v2267_v57, %s2034_s3 }
 0x101   :  { %1103 = vrot.lane.b32.xlu0 %v2239_v41, %s2036_s19  ;;  %1134 = vrot.lane.b32.xlu1 %v959_v53, %s2034_s3 }
 0x105   :  { %1107 = vrot.lane.b32.xlu0 %v932_v54, %s2034_s3  ;;  %1099 = vrot.lane.b32.xlu1 %v1097_v59, %s2037_s6 }
 0x109   :  { %317 = vrot.lane.b32.xlu0 %v315_v60, %s2034_s3  ;;  %306 = vrot.lane.b32.xlu1 %v304_v33, %s2037_s6 }
 0x10d   :  { %290 = vrot.lane.b32.xlu0 %v288_v61, %s2034_s3  ;;  %279 = vrot.lane.b32.xlu1 %v277_v38, %s2037_s6 }
 0x153   :  { %v463_v9 = vpop.permute.xlu0 %462  ;;  %v471_v10 = vpop.permute.xlu1 %470 }
 0x154   :  { %v465_v11 = vsub.f32 %v2287_v6, %v463_v9  ;;  %v473_v18 = vadd.f32 %v471_v10, %v469_v7 }
 0x156   :  { %v1911_v20 = vpack.i.bf16 %v473_v18, %v465_v11 }
 0x157   :  { %v436_v23 = vpop.permute.xlu1 %435  ;;  %v444_v24 = vpop.permute.xlu0 %443 }
 0x158   :  { %v438_v26 = vsub.f32 %v2292_v21, %v436_v23  ;;  %v446_v27 = vadd.f32 %v444_v24, %v442_v22  ;;  %1912 = vrot.lane.b32.xlu1 %v1911_v20, %s2038_s4 }
 0x15a   :  { %v1916_v28 = vpack.i.bf16 %v446_v27, %v438_v26 }
 0x15b   :  { %v630_v31 = vpop.permute.xlu1 %629  ;;  %v638_v32 = vpop.permute.xlu0 %637 }
 0x15c   :  { %v632_v33 = vsub.f32 %v469_v7, %v630_v31  ;;  %v640_v34 = vadd.f32 %v638_v32, %v636_v30  ;;  %1917 = vrot.lane.b32.xlu0 %v1916_v28, %s2038_s4  ;;  %v299_v28 = vmul.f32 %v1693_v17, %v2225_v25 }
 0x15e   :  { %v1921_v36 = vpack.i.bf16 %v640_v34, %v632_v33 }
 0x15f   :  { %v1903_v37 = vpop.permute.xlu1 %1902  ;;  %v611_v38 = vpop.permute.xlu0 %610 }
 0x160   :  { %806 = vrot.lane.b32.xlu0 %v804_v50, %s2037_s6  ;;  %1922 = vrot.lane.b32.xlu1 %v1921_v36, %s2039_s27  ;;  %v613_v45 = vadd.f32 %v611_v38, %v609_v39  ;;  %v1904_v51 = vunpack.i.l.bf16 %v1903_v37  ;;  %v1905_v55 = vunpack.i.h.bf16 %v1903_v37 }
 0x162   :  { %v2310_v56 = vmul.f32 %v1904_v51, %v2250_v46  ;;  %v2317_v0 = vmul.f32 %v1905_v55, %v2255_v49 }
 0x163   :  { %v603_v43 = vpop.permute.xlu1 %602  ;;  %v1908_v44 = vpop.permute.xlu0 %1907 }
 0x164   :  { %v605_v47 = vsub.f32 %v442_v22, %v603_v43  ;;  %v1909_v48 = vunpack.i.l.bf16 %v1908_v44  ;;  %817 = vrot.lane.b32.xlu1 %v815_v40, %s2034_s3  ;;  %v1910_v12 = vunpack.i.h.bf16 %v1908_v44 }
 0x166   :  { %v1926_v52 = vpack.i.bf16 %v613_v45, %v605_v47  ;;  %v968_v50 = vmul.f32 %v1909_v48, %v2250_v46 }
 0x167   :  { %v1131_v53 = vpop.permute.xlu1 %1130  ;;  %v970_v54 = vpop.permute.xlu0 %969 }
 0x168   :  { %1927 = vrot.lane.b32.xlu0 %v1926_v52, %s2039_s27  ;;  %780 = vrot.lane.b32.xlu1 %v2267_v57, %s2037_s6  ;;  %v972_v61 = vadd.f32 %v970_v54, %v968_v50  ;;  %v941_v57 = vmul.f32 %v1910_v12, %v2255_v49  ;;  %v1133_v13 = vmul.f32 %v1131_v53, %v2250_v46 }
 0x16b   :  { %v962_v59 = vpop.permute.xlu1 %961  ;;  %v935_v60 = vpop.permute.xlu0 %934 }
 0x16c   :  { %v964_v62 = vsub.f32 %v2310_v56, %v962_v59  ;;  %791 = vrot.lane.b32.xlu0 %v789_v58, %s2034_s3  ;;  %v937_v4 = vsub.f32 %v2317_v0, %v935_v60 }
 0x16e   :  { %v1931_v63 = vpack.i.bf16 %v972_v61, %v964_v62 }
 0x16f   :  { %v1127_v2 = vpop.permute.xlu0 %1126  ;;  %v943_v3 = vpop.permute.xlu1 %942 }
 0x170   :  { %v945_v5 = vadd.f32 %v943_v3, %v941_v57  ;;  %1932 = vrot.lane.b32.xlu1 %v1931_v63, %s2038_s4  ;;  %v1129_v11 = vsub.f32 %v968_v50, %v1127_v2  ;;  %v799_v50 = vmul.f32 %v2242_v42, %v2250_v46 }
 0x172   :  { %v1936_v7 = vpack.i.bf16 %v945_v5, %v937_v4 }
 0x173   :  { %v1104_v9 = vpop.permute.xlu0 %1103  ;;  %v1135_v10 = vpop.permute.xlu1 %1134 }
 0x174   :  { %v1137_v18 = vadd.f32 %v1135_v10, %v1133_v13  ;;  %1937 = vrot.lane.b32.xlu0 %v1936_v7, %s2038_s4  ;;  %v1106_v19 = vmul.f32 %v1104_v9, %v2255_v49  ;;  %v773_v13 = vmul.f32 %v2239_v41, %v2255_v49  ;;  %v1955_v10 = vld [vmem:[%s2590_s7] sm:$0xff]   ;;  %v1956_v41 = vld [vmem:[%s2590_s7 + $0x8] sm:$0xff]  }
 0x175   :  { %1765 = vmatpush3.bf16.msra.mxu0 %v1955_v10 }
 0x176   :  { %v1941_v20 = vpack.i.bf16 %v1137_v18, %v1129_v11  ;;  %1766 = vmatprep.subr.bf16.mxu0 %v2032_v1 }
 0x177   :  { %v1108_v22 = vpop.permute.xlu0 %1107  ;;  %v1100_v23 = vpop.permute.xlu1 %1099 }
 0x178   :  { %v1110_v24 = vadd.f32 %v1108_v22, %v1106_v19  ;;  %v1102_v26 = vsub.f32 %v941_v57, %v1100_v23  ;;  %1942 = vrot.lane.b32.xlu1 %v1941_v20, %s2039_s27 }
 0x179   :  { %1767 = vmatpush3.bf16.msra.mxu0 %v1956_v41 }
 0x17a   :  { %v1946_v27 = vpack.i.bf16 %v1110_v24, %v1102_v26  ;;  %1778 = vmatprep.subr.bf16.mxu0 %v2032_v1 }
 0x17b   :  { %v318_v30 = vpop.permute.xlu0 %317  ;;  %v307_v31 = vpop.permute.xlu1 %306 }
 0x17c   :  { %v320_v32 = vadd.f32 %v318_v30, %v2287_v6  ;;  %v309_v33 = vsub.f32 %v299_v28, %v307_v31  ;;  %1947 = vrot.lane.b32.xlu0 %v1946_v27, %s2039_s27  ;;  %1769 = vmatmul.mubr.msk.bf16.vlgmr.msra.gmra.mrb[4].mxu0 %vm78_vm1, %v2153_v8 }
 0x17d   :  { %1780 = vmatprep.mubr.msk.bf16.mxu0 %vm2033_vm0, %v2032_v1 }
 0x17e   :  { %v321_v34 = vsel %vm294_vm2, %v309_v33, %v320_v32 }
 0x17f   :  { %v322_v36 = vpack.c.bf16 %v321_v34, %v321_v34  ;;  %v291_v37 = vpop.permute.xlu0 %290  ;;  %v280_v38 = vpop.permute.xlu1 %279 }
 0x180   :  { %v293_v15 = vadd.f32 %v291_v37, %v2292_v21  ;;  %v282_v17 = vsub.f32 %v272_v35, %v280_v38 }
 0x181   :  { %v328_v25 = vsel %vm323_vm3, %v322_v36, 0 }
 0x182   :  { %1773 = vmatpush3.bf16.xpose.msra.mxu1 %v328_v25  ;;  %v295_v6 = vsel %vm294_vm2, %v282_v17, %v293_v15 }
 0x183   :  { %1784 = vmatprep.subr.bf16.mxu1 %v2032_v1  ;;  %v296_v39 = vpack.c.bf16 %v295_v6, %v295_v6  ;;  %v1650_v6 = vld [vmem:[%s2585_s2] ss:$0 sm:$0xff] }
 0x189   :  { %1775 = vmatmul.mubr.msk.bf16.vlgmr.msra.gmra.mrb[4].mxu1 %vm323_vm3, %v296_v39 }
 0x18a   :  { %1786 = vmatprep.mubr.msk.bf16.mxu1 %vm2033_vm0, %v2032_v1 }
 0x1ca   :  { %v1913_v14 = vpop.permute.xlu1 %1912 }
 0x1cb   :  { %v1915_v16 = vunpack.i.h.bf16 %v1913_v14  ;;  %v1914_v29 = vunpack.i.l.bf16 %v1913_v14 }
 0x1cd   :  { %v482_v40 = vsel %vm294_vm2, %v1914_v29, %v1915_v16 }
 0x1ce   :  { %v1918_v21 = vpop.permute.xlu0 %1917  ;;  %v483_v43 = vpack.c.bf16 %v482_v40, %v482_v40 }
 0x1cf   :  { %v1920_v44 = vunpack.i.h.bf16 %v1918_v21  ;;  %v1919_v45 = vunpack.i.l.bf16 %v1918_v21 }
 0x1d0   :  { %v488_v47 = vsel %vm323_vm3, %v483_v43, 0 }
 0x1d1   :  { %1785 = vmatpush3.bf16.xpose.msra.mxu1 %v488_v47  ;;  %v455_v51 = vsel %vm294_vm2, %v1919_v45, %v1920_v44 }
 0x1d2   :  { %v1923_v48 = vpop.permute.xlu1 %1922  ;;  %1796 = vmatprep.subr.bf16.mxu1 %v2032_v1  ;;  %v807_v54 = vpop.permute.xlu0 %806  ;;  %v456_v12 = vpack.c.bf16 %v455_v51, %v455_v51 }
 0x1d3   :  { %v1925_v52 = vunpack.i.h.bf16 %v1923_v48  ;;  %v1924_v53 = vunpack.i.l.bf16 %v1923_v48  ;;  %v809_v60 = vsub.f32 %v799_v50, %v807_v54 }
 0x1d5   :  { %v649_v55 = vsel %vm294_vm2, %v1924_v53, %v1925_v52 }
 0x1d6   :  { %v818_v58 = vpop.permute.xlu1 %817  ;;  %v650_v59 = vpack.c.bf16 %v649_v55, %v649_v55 }
 0x1d7   :  { %v820_v61 = vadd.f32 %v818_v58, %v2310_v56  ;;  %v1658_v58 = vld [vmem:[%s2585_s2 + $0x1] ss:$0 sm:$0xff] }
 0x1d8   :  { %1787 = vmatmul.mubr.msk.bf16.vlgmr.msra.gmra.mrb[8].mxu1 %vm323_vm3, %v456_v12  ;;  %v655_v62 = vsel %vm323_vm3, %v650_v59, 0 }
 0x1d9   :  { %v821_v63 = vsel %vm294_vm2, %v809_v60, %v820_v61  ;;  %1797 = vmatpush3.bf16.xpose.msra.mxu1 %v655_v62  ;;  %1798 = vmatprep.mubr.msk.bf16.mxu1 %vm2033_vm0, %v2032_v1 }
 0x1da   :  { %v1928_v57 = vpop.permute.xlu0 %1927  ;;  %1808 = vmatprep.subr.bf16.mxu1 %v2032_v1  ;;  %v822_v2 = vpack.c.bf16 %v821_v63, %v821_v63  ;;  %v781_v56 = vpop.permute.xlu1 %780 }
 0x1db   :  { %v1930_v42 = vunpack.i.h.bf16 %v1928_v57  ;;  %v1929_v46 = vunpack.i.l.bf16 %v1928_v57  ;;  %v783_v11 = vsub.f32 %v773_v13, %v781_v56 }
 0x1dc   :  { %v827_v9 = vsel %vm323_vm3, %v822_v2, 0 }
 0x1dd   :  { %v622_v3 = vsel %vm294_vm2, %v1929_v46, %v1930_v42 }
 0x1de   :  { %v623_v4 = vpack.c.bf16 %v622_v3, %v622_v3  ;;  %v792_v5 = vpop.permute.xlu0 %791 }
 0x1df   :  { %v794_v7 = vadd.f32 %v792_v5, %v2317_v0 }
 0x1e0   :  { %1799 = vmatmul.mubr.msk.bf16.vlgmr.msra.gmra.mrb[12].mxu1 %vm323_vm3, %v623_v4 }
 0x1e1   :  { %1809 = vmatpush3.bf16.xpose.msra.mxu1 %v827_v9  ;;  %1810 = vmatprep.mubr.msk.bf16.mxu1 %vm2033_vm0, %v2032_v1  ;;  %v795_v49 = vsel %vm294_vm2, %v783_v11, %v794_v7 }
 0x1e2   :  { %v1933_v18 = vpop.permute.xlu1 %1932  ;;  %1820 = vmatprep.subr.bf16.mxu1 %v2032_v1  ;;  %v796_v22 = vpack.c.bf16 %v795_v49, %v795_v49 }
 0x1e3   :  { %v1935_v0 = vunpack.i.h.bf16 %v1933_v18  ;;  %v1934_v19 = vunpack.i.l.bf16 %v1933_v18  ;;  %v1640_v18 = vld [vmem:[%s2591_s8] ss:$0 sm:$0xff]  ;;  %s2040_s8 = smov 32  }
 0x1e5   :  { %v981_v20 = vsel %vm294_vm2, %v1934_v19, %v1935_v0 }
 0x1e6   :  { %v1938_v23 = vpop.permute.xlu0 %1937  ;;  %v982_v24 = vpack.c.bf16 %v981_v20, %v981_v20 }
 0x1e7   :  { %v1940_v26 = vunpack.i.h.bf16 %v1938_v23  ;;  %v1939_v27 = vunpack.i.l.bf16 %v1938_v23 }
 0x1e8   :  { %1811 = vmatmul.mubr.msk.bf16.vlgmr.msra.gmra.mrb[16].mxu1 %vm323_vm3, %v796_v22  ;;  %v987_v28 = vsel %vm323_vm3, %v982_v24, 0 }
 0x1e9   :  { %1821 = vmatpush3.bf16.xpose.msra.mxu1 %v987_v28  ;;  %1822 = vmatprep.mubr.msk.bf16.mxu1 %vm2033_vm0, %v2032_v1  ;;  %v954_v31 = vsel %vm294_vm2, %v1939_v27, %v1940_v26 }
 0x1ea   :  { %v1943_v30 = vpop.permute.xlu1 %1942  ;;  %1832 = vmatprep.subr.bf16.mxu1 %v2032_v1  ;;  %v955_v35 = vpack.c.bf16 %v954_v31, %v954_v31 }
 0x1eb   :  { %v1945_v32 = vunpack.i.h.bf16 %v1943_v30  ;;  %v1944_v33 = vunpack.i.l.bf16 %v1943_v30 }
 0x1ed   :  { %v1146_v34 = vsel %vm294_vm2, %v1944_v33, %v1945_v32 }
 0x1ee   :  { %v1948_v36 = vpop.permute.xlu0 %1947  ;;  %v1147_v37 = vpack.c.bf16 %v1146_v34, %v1146_v34 }
 0x1ef   :  { %v1950_v38 = vunpack.i.h.bf16 %v1948_v36  ;;  %v1949_v15 = vunpack.i.l.bf16 %v1948_v36 }
 0x1f0   :  { %1823 = vmatmul.mubr.msk.bf16.vlgmr.msra.gmra.mrb[20].mxu1 %vm323_vm3, %v955_v35  ;;  %v1152_v17 = vsel %vm323_vm3, %v1147_v37, 0 }
 0x1f1   :  { %1833 = vmatpush3.bf16.xpose.msra.mxu1 %v1152_v17  ;;  %1834 = vmatprep.mubr.msk.bf16.mxu1 %vm2033_vm0, %v2032_v1  ;;  %v1119_v8 = vsel %vm294_vm2, %v1949_v15, %v1950_v38 }
 0x1f2   :  { %1854 = vmatprep.subr.bf16.mxu1 %v2032_v1  ;;  %v1120_v25 = vpack.c.bf16 %v1119_v8, %v1119_v8 }
 0x1f8   :  { %1835 = vmatmul.mubr.msk.bf16.vlgmr.msra.gmra.mrb[24].mxu1 %vm323_vm3, %v1120_v25 }
 0x1f9   :  { %1870 = vmatprep.mubr.msk.bf16.mxu1 %vm2033_vm0, %v2032_v1 }
 0x24f   :  { %v244_v41 = vpop.f32.mrb[4].mxu0 }
 0x250   :  { %v245_v49 = vadd.f32 %v1640_v18, %v244_v41  ;;  %v1770_v0 = vpop.f32.mrb[5].mxu0 }
 0x251   :  { %v247_v19 = vpop.f32.mrb[6].mxu0 }
 0x252   :  { %v248_v20 = vadd.f32 %v1640_v18, %v247_v19  ;;  %v1771_v22 = vpop.f32.mrb[7].mxu0 }
 0x254   :  { %v251_v23 = vpack.c.bf16 %v248_v20, %v245_v49 }
 0x256   :  { %v387_v24 = vsel %vm385_vm4, %v251_v23, 0 }
 0x257   :  { %1779 = vmatpush3.bf16.msra.mxu0 %v387_v24 }
 0x258   :  { %1790 = vmatprep.subr.bf16.mxu0 %v2032_v1 }
 0x25c   :  { %v364_v39 = vpop.f32.mrb[4].mxu1 }
 0x25d   :  { %v365_v14 = vadd.f32 %v1650_v6, %v364_v39  ;;  %v1776_v16 = vpop.f32.mrb[5].mxu1 }
 0x25e   :  { %v367_v29 = vpop.f32.mrb[6].mxu1 }
 0x25f   :  { %v1777_v40 = vpop.f32.mrb[7].mxu1  ;;  %v370_v21 = vsel %vm294_vm2, %v365_v14, -inf }
 0x260   :  { %371 = vmax.xlane.f32.xlu1 %v370_v21 }
 0x2ab   :  { %v524_v43 = vpop.f32.mrb[8].mxu1 }
 0x2ac   :  { %v525_v44 = vadd.f32 %v1650_v6, %v524_v43  ;;  %v1788_v45 = vpop.f32.mrb[9].mxu1 }
 0x2ad   :  { %v527_v47 = vpop.f32.mrb[10].mxu1 }
 0x2ae   :  { %v1789_v48 = vpop.f32.mrb[11].mxu1  ;;  %v530_v51 = vsel %vm294_vm2, %v525_v44, -inf }
 0x2af   :  { %531 = vmax.xlane.f32.xlu0 %v530_v51 }
 0x2b3   :  { %v691_v52 = vpop.f32.mrb[12].mxu1 }
 0x2b4   :  { %v692_v53 = vadd.f32 %v1650_v6, %v691_v52  ;;  %v1800_v54 = vpop.f32.mrb[13].mxu1 }
 0x2b5   :  { %v694_v50 = vpop.f32.mrb[14].mxu1  ;;  %v881_v54 = vrot.slane %v251_v23, 4 }
 0x2b6   :  { %v1801_v55 = vpop.f32.mrb[15].mxu1  ;;  %v697_v12 = vsel %vm294_vm2, %v692_v53, -inf }
 0x2b7   :  { %698 = vmax.xlane.f32.xlu0 %v697_v12 }
 0x2bb   :  { %v863_v59 = vpop.f32.mrb[16].mxu1 }
 0x2bc   :  { %v2404_v60 = vadd.f32 %v1658_v58, %v863_v59  ;;  %v1812_v61 = vpop.f32.mrb[17].mxu1 }
 0x2bd   :  { %v866_v62 = vpop.f32.mrb[18].mxu1 }
 0x2be   :  { %v1813_v63 = vpop.f32.mrb[19].mxu1  ;;  %v869_v57 = vsel %vm294_vm2, %v2404_v60, -inf }
 0x2bf   :  { %870 = vmax.xlane.f32.xlu1 %v869_v57 }
 0x2c3   :  { %v1023_v42 = vpop.f32.mrb[20].mxu1 }
 0x2c4   :  { %v1024_v46 = vadd.f32 %v1658_v58, %v1023_v42  ;;  %v1824_v2 = vpop.f32.mrb[21].mxu1 }
 0x2c5   :  { %v1026_v3 = vpop.f32.mrb[22].mxu1 }
 0x2c6   :  { %v1825_v4 = vpop.f32.mrb[23].mxu1  ;;  %v1029_v56 = vsel %vm294_vm2, %v1024_v46, -inf }
 0x2c7   :  { %1030 = vmax.xlane.f32.xlu0 %v1029_v56 }
 0x2cb   :  { %v1188_v5 = vpop.f32.mrb[24].mxu1 }
 0x2cc   :  { %v1189_v13 = vadd.f32 %v1658_v58, %v1188_v5  ;;  %v1836_v7 = vpop.f32.mrb[25].mxu1 }
 0x2cd   :  { %v1191_v9 = vpop.f32.mrb[26].mxu1 }
 0x2ce   :  { %v1837_v10 = vpop.f32.mrb[27].mxu1  ;;  %v1194_v11 = vsel %vm294_vm2, %v1189_v13, -inf }
 0x2cf   :  { %1195 = vmax.xlane.f32.xlu1 %v1194_v11 }
 0x2ed   :  { %v372_v26 = vpop.xlane.xlu1 %371 }
 0x2ee   :  { %v373_v27 = vsub.f32 %v365_v14, %v372_v26 }
 0x2f0   :  { %v374_v28 = vmul.f32 1.442695, %v373_v27 }
 0x2f2   :  { %1974 = vpow2.f32 %v374_v28 }
 0x2fc   :  { %v1975_v30 = vpop.eup %1974 }
 0x2fd   :  { %v376_v31 = vsel %vm294_vm2, %v1975_v30, 0.0 }
 0x2fe   :  { %377 = vadd.xlane.f32.xlu0 %v376_v31 }
 0x33c   :  { %v532_v32 = vpop.xlane.xlu0 %531 }
 0x33d   :  { %v533_v33 = vsub.f32 %v525_v44, %v532_v32 }
 0x33f   :  { %v534_v34 = vmul.f32 1.442695, %v533_v33 }
 0x341   :  { %1976 = vpow2.f32 %v534_v34 }
 0x344   :  { %v699_v35 = vpop.xlane.xlu0 %698 }
 0x345   :  { %v700_v36 = vsub.f32 %v692_v53, %v699_v35 }
 0x347   :  { %v701_v37 = vmul.f32 1.442695, %v700_v36 }
 0x349   :  { %1978 = vpow2.f32 %v701_v37 }
 0x34b   :  { %v1977_v38 = vpop.eup %1976 }
 0x34c   :  { %v536_v15 = vsel %vm294_vm2, %v1977_v38, 0.0  ;;  %v871_v14 = vpop.xlane.xlu1 %870 }
 0x34d   :  { %537 = vadd.xlane.f32.xlu1 %v536_v15  ;;  %v872_v45 = vsub.f32 %v2404_v60, %v871_v14  ;;  %v1958_v14 = vld [vmem:[%s2592_s9 + $0x8] sm:$0xff]  }
 0x34f   :  { %v873_v48 = vmul.f32 1.442695, %v872_v45 }
 0x353   :  { %v1979_v17 = vpop.eup %1978 }
 0x354   :  { %v1031_v8 = vpop.xlane.xlu0 %1030  ;;  %v703_v25 = vsel %vm294_vm2, %v1979_v17, 0.0 }
 0x355   :  { %v1032_v6 = vsub.f32 %v1024_v46, %v1031_v8  ;;  %704 = vadd.xlane.f32.xlu0 %v703_v25 }
 0x357   :  { %v1033_v39 = vmul.f32 1.442695, %v1032_v6 }
 0x359   :  { %1980 = vpow2.f32 %v1033_v39 }
 0x35c   :  { %v1196_v16 = vpop.xlane.xlu1 %1195 }
 0x35d   :  { %v1197_v29 = vsub.f32 %v1189_v13, %v1196_v16  ;;  %v886_v13 = vsel %vm385_vm4, %v881_v54, 0  ;;  %v1959_v16 = vld [vmem:[%s2592_s9 + $0x10] sm:$0xff]  }
 0x35e   :  { %543 = vrot.lane.b32.xlu1 %v251_v23, %s2038_s4 }
 0x35f   :  { %v1198_v40 = vmul.f32 1.442695, %v1197_v29 }
 0x361   :  { %1982 = vpow2.f32 %v1198_v40 }
 0x362   :  { %1984 = vpow2.f32 %v873_v48 }
 0x363   :  { %v2419_v21 = vpop.eup %1980 }
 0x364   :  { %v1035_v43 = vsel %vm294_vm2, %v2419_v21, 0.0 }
 0x365   :  { %1036 = vadd.xlane.f32.xlu0 %v1035_v43 }
 0x36b   :  { %v2423_v44 = vpop.eup %1982 }
 0x36c   :  { %v1200_v47 = vsel %vm294_vm2, %v2423_v44, 0.0  ;;  %v1985_v51 = vpop.eup %1984 }
 0x36d   :  { %1201 = vadd.xlane.f32.xlu0 %v1200_v47  ;;  %v875_v52 = vsel %vm294_vm2, %v1985_v51, 0.0 }
 0x382   :  { %876 = vadd.xlane.f32.xlu1 %v875_v52 }
 0x383   :  { %709 = vrot.lane.b32.xlu0 %v251_v23, %s2039_s27 }
 0x38b   :  { %v378_v53 = vpop.xlane.xlu0 %377 }
 0x38c   :  { %1986 = vrcp.f32 %v378_v53 }
 0x393   :  { %1041 = vrot.lane.b32.xlu1 %v881_v54, %s2038_s4 }
 0x396   :  { %v1987_v50 = vpop.eup %1986 }
 0x397   :  { %v380_v55 = vmul.f32 %v1987_v50, %v1975_v30  ;;  %1206 = vrot.lane.b32.xlu1 %v881_v54, %s2039_s27 }
 0x399   :  { %v381_v12 = vpack.c.bf16 %v380_v55, %v380_v55 }
 0x39b   :  { %1781 = vmatmul.mubr.msk.bf16.vlgmr.msra.gmra.mrb[8].mxu0 %vm294_vm2, %v381_v12 }
 0x39c   :  { %1792 = vmatprep.mubr.msk.bf16.mxu0 %vm2033_vm0, %v2032_v1 }
 0x3da   :  { %v538_v58 = vpop.xlane.xlu1 %537 }
 0x3db   :  { %1988 = vrcp.f32 %v538_v58  ;;  %v1665_v58 = vld [vmem:[%s2593_s10] ss:$0 sm:$0xff] }
 0x3de   :  { %v544_v59 = vpop.permute.xlu1 %543 }
 0x3df   :  { %v549_v60 = vsel %vm385_vm4, %v544_v59, 0  ;;  %v2006_v59 = vld [vmem:[%s2583_s0] sm:$0xff] }
 0x3e0   :  { %1791 = vmatpush3.bf16.msra.mxu0 %v549_v60  ;;  %v1339_v60 = vmul.f32 1.8612098, %v2006_v59 }
 0x3e1   :  { %1802 = vmatprep.subr.bf16.mxu0 %v2032_v1 }
 0x3e2   :  { %v705_v57 = vpop.xlane.xlu0 %704 }
 0x3e3   :  { %1990 = vrcp.f32 %v705_v57  ;;  %v2007_v57 = vld [vmem:[%s2583_s0 + $0x8] sm:$0xff]  ;;  %s2042_s0 = smov [#allocation3]  }
 0x3e4   :  { %s1621_s10 = sshll.u32 %s2042_s0, 4  ;;  %s1622_s10 = int_to_ptr.vmem [resolvable:$true] %s1621_s10 }
 0x3e5   :  { %v1989_v61 = vpop.eup %1988  ;;  %p2013_p1 = scmp.lt.s32.totalorder %s1622_s10, %s1622_s10 }
 0x3e6   :  { %v540_v62 = vmul.f32 %v1989_v61, %v1977_v38 }
 0x3e8   :  { %v541_v63 = vpack.c.bf16 %v540_v62, %v540_v62 }
 0x3ea   :  { %1793 = vmatmul.mubr.msk.bf16.vlgmr.msra.gmra.mrb[12].mxu0 %vm294_vm2, %v541_v63 }
 0x3eb   :  { %1804 = vmatprep.mubr.msk.bf16.mxu0 %vm2033_vm0, %v2032_v1 }
 0x3ed   :  { %v1991_v46 = vpop.eup %1990 }
 0x3ee   :  { %v707_v3 = vmul.f32 %v1991_v46, %v1979_v17  ;;  %v1957_v17 = vld [vmem:[%s2592_s9] sm:$0xff]  }
 0x3f0   :  { %v708_v5 = vpack.c.bf16 %v707_v3, %v707_v3 }
 0x3f2   :  { %v1037_v42 = vpop.xlane.xlu0 %1036 }
 0x3fa   :  { %v1202_v2 = vpop.xlane.xlu0 %1201 }
 0x3fe   :  { %v710_v4 = vpop.permute.xlu0 %709 }
 0x3ff   :  { %v715_v56 = vsel %vm385_vm4, %v710_v4, 0 }
 0x400   :  { %1803 = vmatpush3.bf16.msra.mxu0 %v715_v56 }
 0x401   :  { %1814 = vmatprep.subr.bf16.mxu0 %v2032_v1 }
 0x403   :  { %1805 = vmatmul.mubr.msk.bf16.vlgmr.msra.gmra.mrb[16].mxu0 %vm294_vm2, %v708_v5 }
 0x404   :  { %1815 = vmatpush3.bf16.msra.mxu0 %v886_v13  ;;  %1816 = vmatprep.mubr.msk.bf16.mxu0 %vm2033_vm0, %v2032_v1 }
 0x405   :  { %1826 = vmatprep.subr.bf16.mxu0 %v2032_v1 }
 0x40f   :  { %v877_v7 = vpop.xlane.xlu1 %876 }
 0x410   :  { %1992 = vrcp.f32 %v877_v7 }
 0x411   :  { %1994 = vrcp.f32 %v1037_v42  ;;  %v1340_v42 = vmul.f32 1.8612098, %v2007_v57 }
 0x412   :  { %1996 = vrcp.f32 %v1202_v2 }
 0x413   :  { %v1042_v11 = vpop.permute.xlu1 %1041 }
 0x414   :  { %v1047_v49 = vsel %vm385_vm4, %v1042_v11, 0 }
 0x417   :  { %v1207_v19 = vpop.permute.xlu1 %1206 }
 0x418   :  { %v1212_v23 = vsel %vm385_vm4, %v1207_v19, 0  ;;  %v1963_v19 = vld [vmem:[%s2595_s12 + $0x10] ss:$8 sps:$4 sm:$0xff]  }
 0x41a   :  { %v1993_v9 = vpop.eup %1992 }
 0x41b   :  { %v879_v10 = vmul.f32 %v1993_v9, %v1985_v51  ;;  %v1995_v41 = vpop.eup %1994 }
 0x41c   :  { %v1039_v0 = vmul.f32 %v1995_v41, %v2419_v21  ;;  %v1997_v22 = vpop.eup %1996  ;;  %v1962_v41 = vld [vmem:[%s2595_s12 + $0x4] ss:$8 sps:$4 sm:$0xff]  }
 0x41d   :  { %v880_v18 = vpack.c.bf16 %v879_v10, %v879_v10  ;;  %v1204_v24 = vmul.f32 %v1997_v22, %v2423_v44  ;;  %v1967_v22 = vld [vmem:[%s2596_s13 + $0x8] sm:$0xff]  }
 0x41e   :  { %v1040_v20 = vpack.c.bf16 %v1039_v0, %v1039_v0  ;;  %v2041_v0 = vmov 0  }
 0x41f   :  { %1817 = vmatmul.mubr.msk.bf16.vlgmr.msra.gmra.mrb[20].mxu0 %vm294_vm2, %v880_v18  ;;  %v1205_v26 = vpack.c.bf16 %v1204_v24, %v1204_v24  ;;  %v1960_v18 = vld [vmem:[%s2595_s12] ss:$8 sps:$4 sm:$0xff]   ;;  %v1969_v24 = vld [vmem:[%s2596_s13 + $0x18] sm:$0xff]  }
 0x420   :  { %1827 = vmatpush3.bf16.msra.mxu0 %v1047_v49  ;;  %1828 = vmatprep.mubr.msk.bf16.mxu0 %vm2033_vm0, %v2032_v1  ;;  %v1965_v49 = vld [vmem:[%s2595_s12 + $0x14] ss:$8 sps:$4 sm:$0xff]  }
 0x421   :  { %1838 = vmatprep.subr.bf16.mxu0 %v2032_v1 }
 0x427   :  { %1829 = vmatmul.mubr.msk.bf16.vlgmr.msra.gmra.mrb[24].mxu0 %vm294_vm2, %v1040_v20  ;;  %v1966_v20 = vld [vmem:[%s2596_s13] sm:$0xff]  }
 0x428   :  { %1839 = vmatpush3.bf16.msra.mxu0 %v1212_v23  ;;  %1840 = vmatprep.mubr.msk.bf16.mxu0 %vm2033_vm0, %v2032_v1  ;;  %v1968_v23 = vld [vmem:[%s2596_s13 + $0x10] sm:$0xff]  }
 0x429   :  { %1844 = vmatprep.subr.bf16.mxu0 %v2032_v1  ;;  %1855 = vmatpush3.bf16.msra.mxu1 %v1966_v20 }
 0x42a   :  { %1856 = vmatprep.subr.bf16.mxu1 %v2032_v1 }
 0x42d   :  { %1857 = vmatpush3.bf16.msra.mxu1 %v1967_v22 }
 0x42e   :  { %1858 = vmatprep.subr.bf16.mxu1 %v2032_v1 }
 0x42f   :  { %1841 = vmatmul.mubr.msk.bf16.vlgmr.msra.gmra.mrb[28].mxu0 %vm294_vm2, %v1205_v26  ;;  %v1970_v26 = vld [vmem:[%s2596_s13 + $0x20] sm:$0xff]  }
 0x430   :  { %1850 = vmatprep.mubr.msk.bf16.mxu0 %vm2033_vm0, %v2032_v1  ;;  %1845 = vmatpush3.bf16.msra.mxu0 %v1957_v17  ;;  %v1374_v17 = vlaneseq }
 0x431   :  { %1846 = vmatprep.subr.bf16.mxu0 %v2032_v1  ;;  %1859 = vmatpush3.bf16.msra.mxu1 %v1968_v23 }
 0x432   :  { %1860 = vmatprep.subr.bf16.mxu1 %v2032_v1 }
 0x434   :  { %1847 = vmatpush3.bf16.msra.mxu0 %v1958_v14 }
 0x435   :  { %1848 = vmatprep.subr.bf16.mxu0 %v2032_v1  ;;  %1861 = vmatpush3.bf16.msra.mxu1 %v1969_v24 }
 0x436   :  { %1862 = vmatprep.subr.bf16.mxu1 %v2032_v1 }
 0x438   :  { %1849 = vmatpush3.bf16.msra.mxu0 %v1959_v16  ;;  %v1338_v16 = vld [vmem:[%s2594_s11] sm:$0x3] }
 0x439   :  { %1414 = vmatprep.subr.bf16.mxu0 %v1962_v41  ;;  %1863 = vmatpush3.bf16.msra.mxu1 %v1970_v26 }
 0x43a   :  { %1864 = vmatprep.subr.bf16.mxu1 %v2032_v1 }
 0x46e   :  { %v423_v27 = vpop.f32.mrb[8].mxu0 }
 0x46f   :  { %429 = vst.msk [vmem:[#allocation2] sm:$0xff] %vm323_vm3, %v423_v27  ;;  %v1782_v28 = vpop.f32.mrb[9].mxu0  ;;  %v1971_v27 = vld [vmem:[%s2596_s13 + $0x28] sm:$0xff]  }
 0x470   :  { %v426_v30 = vpop.f32.mrb[10].mxu0  ;;  %1865 = vmatpush3.bf16.msra.mxu1 %v1971_v27 }
 0x471   :  { %v1783_v31 = vpop.f32.mrb[11].mxu0  ;;  %1866 = vmatprep.subr.bf16.mxu1 %v2032_v1 }
 0x4bd   :  { %v585_v32 = vpop.f32.mrb[12].mxu0 }
 0x4be   :  { %592 = vrot.lane.b32.xlu1 %v585_v32, %s2035_s18  ;;  %v1794_v33 = vpop.f32.mrb[13].mxu0 }
 0x4bf   :  { %v588_v34 = vpop.f32.mrb[14].mxu0 }
 0x4c0   :  { %v1795_v35 = vpop.f32.mrb[15].mxu0 }
 0x4d6   :  { %v751_v36 = vpop.f32.mrb[16].mxu0 }
 0x4d7   :  { %758 = vrot.lane.b32.xlu1 %v751_v36, %s2040_s8  ;;  %v1806_v37 = vpop.f32.mrb[17].mxu0 }
 0x4d8   :  { %v754_v38 = vpop.f32.mrb[18].mxu0 }
 0x4d9   :  { %v1807_v15 = vpop.f32.mrb[19].mxu0 }
 0x4f2   :  { %v922_v8 = vpop.f32.mrb[20].mxu0 }
 0x4f3   :  { %928 = vst.msk [vmem:[#allocation2 + $0x8] sm:$0xff] %vm323_vm3, %v922_v8  ;;  %v1818_v25 = vpop.f32.mrb[21].mxu0 }
 0x4f4   :  { %v925_v6 = vpop.f32.mrb[22].mxu0 }
 0x4f5   :  { %v1819_v39 = vpop.f32.mrb[23].mxu0 }
 0x4f6   :  { %v2536_v39 = vshrl.u32 %v1374_v17, 7 }
 0x4f8   :  { %v1376_v14 = vsub.s32 0, %v2536_v39 }
 0x4fa   :  { %v1083_v29 = vpop.f32.mrb[24].mxu0 }
 0x4fb   :  { %1090 = vrot.lane.b32.xlu0 %v1083_v29, %s2035_s18  ;;  %v1830_v40 = vpop.f32.mrb[25].mxu0 }
 0x4fc   :  { %v1086_v21 = vpop.f32.mrb[26].mxu0  ;;  %v1377_v40 = vrot.slane %v1338_v16, %v1376_v14 }
 0x4fd   :  { %v1831_v43 = vpop.f32.mrb[27].mxu0  ;;  %v1382_v21 = vsub.s32 1, %v2536_v39 }
 0x502   :  { %v1248_v44 = vpop.f32.mrb[28].mxu0 }
 0x503   :  { %1255 = vrot.lane.b32.xlu0 %v1248_v44, %s2040_s8  ;;  %v1842_v45 = vpop.f32.mrb[29].mxu0 }
 0x504   :  { %v1251_v47 = vpop.f32.mrb[30].mxu0 }
 0x505   :  { %v1843_v48 = vpop.f32.mrb[31].mxu0 }
 0x530   :  { %v593_v51 = vpop.permute.xlu1 %592 }
 0x531   :  { %596 = vst.msk [vmem:[#allocation2] sm:$0xff] %vm595_vm5, %v593_v51 }
 0x549   :  { %v759_v52 = vpop.permute.xlu1 %758 }
 0x54a   :  { %762 = vst.msk [vmem:[#allocation2] sm:$0xff] %vm761_vm6, %v759_v52  ;;  %v1383_v52 = vrot.slane %v1338_v16, %v1382_v21 }
 0x551   :  { %v1259_v50 = vld [vmem:[#allocation2] sm:$0xff] }
 0x56d   :  { %v1091_v53 = vpop.permute.xlu0 %1090 }
 0x56e   :  { %1093 = vst.msk [vmem:[#allocation2 + $0x8] sm:$0xff] %vm595_vm5, %v1091_v53 }
 0x575   :  { %v1256_v54 = vpop.permute.xlu0 %1255 }
 0x576   :  { %1258 = vst.msk [vmem:[#allocation2 + $0x8] sm:$0xff] %vm761_vm6, %v1256_v54 }
 0x57d   :  { %v1260_v55 = vld [vmem:[#allocation2 + $0x8] sm:$0xff] }
 0x57e   :  { %v1261_v12 = vpack.c.bf16 %v1260_v55, %v1259_v50 }
 0x580   :  { %1851 = vmatmul.mubr.msk.bf16.vlgmr.msra.gmra.mrb[32].mxu0 %vm1293_vm7, %v1261_v12  ;;  %v1972_v12 = vld [vmem:[%s2596_s13 + $0x30] sm:$0xff]  }
 0x581   :  { %1446 = vmatprep.mubr.bf16.mxu0 %v2041_v0  ;;  %1415 = vmatpush1.bf16.msra.mxu0 %v1960_v18 }
 0x582   :  { %1416 = vmatprep.subr.bf16.mxu0 %v1965_v49  ;;  %1867 = vmatpush3.bf16.msra.mxu1 %v1972_v12 }
 0x583   :  { %1868 = vmatprep.subr.bf16.mxu1 %v2032_v1 }
 0x585   :  { %1417 = vmatpush1.bf16.msra.mxu0 %v1963_v19 }
 0x653   :  { %v1331_v61 = vpop.f32.mrb[32].mxu0 }
 0x654   :  { %v1332_v62 = vadd.f32 %v1665_v58, %v1331_v61  ;;  %v1852_v63 = vpop.f32.mrb[33].mxu0 }
 0x655   :  { %v1334_v46 = vpop.f32.mrb[34].mxu0 }
 0x656   :  { %v2486_v2 = vadd.f32 %v1339_v60, %v1332_v62  ;;  %v1335_v3 = vadd.f32 %v1665_v58, %v1334_v46  ;;  %v1853_v4 = vpop.f32.mrb[35].mxu0  ;;  %v1973_v58 = vld [vmem:[%s2596_s13 + $0x38] sm:$0xff]  }
 0x657   :  { %1869 = vmatpush3.bf16.msra.mxu1 %v1973_v58 }
 0x658   :  { %v2488_v56 = vadd.f32 %v1340_v42, %v1335_v3  ;;  %v1343_v5 = vsel %vm78_vm1, %v2486_v2, 0.0  ;;  %v1352_v9 = vmul.f32 %v2486_v2, %v2486_v2 }
 0x659   :  { %1344 = vadd.xlane.f32.xlu1 %v1343_v5 }
 0x65a   :  { %v1346_v13 = vsel %vm78_vm1, %v2488_v56, 0.0  ;;  %v1353_v7 = vmul.f32 %v2488_v56, %v2488_v56  ;;  %v1354_v11 = vsel %vm78_vm1, %v1352_v9, 0.0 }
 0x65b   :  { %1347 = vadd.xlane.f32.xlu0 %v1346_v13 }
 0x65c   :  { %v1357_v10 = vsel %vm78_vm1, %v1353_v7, 0.0 }
 0x65d   :  { %1358 = vadd.xlane.f32.xlu1 %v1357_v10 }
 0x65f   :  { %1355 = vadd.xlane.f32.xlu0 %v1354_v11 }
 0x6e6   :  { %v1345_v28 = vpop.xlane.xlu1 %1344 }
 0x6e7   :  { %v1350_v31 = vmul.f32 0.03125, %v1345_v28 }
 0x6e8   :  { %v1348_v30 = vpop.xlane.xlu0 %1347 }
 0x6e9   :  { %v1351_v32 = vmul.f32 0.03125, %v1348_v30  ;;  %v1362_v37 = vmul.f32 %v1350_v31, %v1350_v31  ;;  %v1366_v44 = vsub.f32 %v2486_v2, %v1350_v31 }
 0x6ea   :  { %v1359_v33 = vpop.xlane.xlu1 %1358 }
 0x6eb   :  { %v1363_v34 = vmul.f32 %v1351_v32, %v1351_v32  ;;  %v1361_v35 = vmul.f32 0.03125, %v1359_v33  ;;  %v1367_v29 = vsub.f32 %v2488_v56, %v1351_v32 }
 0x6ec   :  { %v1356_v36 = vpop.xlane.xlu0 %1355 }
 0x6ed   :  { %v1365_v38 = vsub.f32 %v1361_v35, %v1363_v34  ;;  %v1360_v15 = vmul.f32 0.03125, %v1356_v36  ;;  %v1567_v36 = vld [vmem:[%s2597_s14] sm:$0x3]  ;;  %s2008_s14 = scalar_lea.vmem %s1622_s10, 256 }
 0x6ee   :  { %p2009_p0 = scmp.ne.s32.totalorder %s1622_s10, %s2008_s14  ;;  %p2014_p2 = scmp.lt.s32.totalorder %s2008_s14, %s2008_s14 }
 0x6ef   :  { %v1369_v8 = vadd.f32 1e-05, %v1365_v38  ;;  %v1364_v25 = vsub.f32 %v1360_v15, %v1362_v37  ;;  %v1605_v38 = vrot.slane %v1567_v36, %v1376_v14 }
 0x6f0   :  { %p2015_p3 = por %p2014_p2, %p2013_p1 }
 0x6f1   :  { %1998 = vrsqrt.f32 %v1369_v8  ;;  %v1368_v6 = vadd.f32 1e-05, %v1364_v25  ;;  %v1611_v25 = vrot.slane %v1567_v36, %v1382_v21 }
 0x6f2   :  { %p2016_p4 = pnand %p2015_p3, %p2009_p0 }
 0x6f3   :  { %2000 = vrsqrt.f32 %v1368_v6 }
 0x6fb   :  { %v1999_v43 = vpop.eup %1998 }
 0x6fc   :  { %v1373_v45 = vmul.f32 %v1999_v43, %v1367_v29 }
 0x6fd   :  { %v2001_v47 = vpop.eup %2000 }
 0x6fe   :  { %v1372_v48 = vmul.f32 %v2001_v47, %v1366_v44  ;;  %v1379_v51 = vmul.f32 %v1377_v40, %v1373_v45 }
 0x700   :  { %v1378_v53 = vmul.f32 %v1377_v40, %v1372_v48  ;;  %v1385_v50 = vadd.f32 %v1383_v52, %v1379_v51 }
 0x702   :  { %v1384_v54 = vadd.f32 %v1383_v52, %v1378_v53  ;;  %v1569_v1 = vmul.f32 1.8612098, %v1385_v50 }
 0x704   :  { %v1386_v55 = vpack.c.bf16 %v1385_v50, %v1384_v54  ;;  %v1568_v3 = vmul.f32 1.8612098, %v1384_v54 }
 0x706   :  { %1674 = vmatmul.mubr.msk.bf16.vlgmr.msra.gmra.mrb[36].mxu0 %vm78_vm1, %v1386_v55 }
 0x7d9   :  { %v1448_v59 = vpop.f32.mrb[36].mxu0 }
 0x7da   :  { %v1457_v60 = vmax.f32 %v1448_v59, 0.0  ;;  %v1450_v61 = vpop.f32.mrb[37].mxu0 }
 0x7db   :  { %v1452_v62 = vpop.f32.mrb[38].mxu0 }
 0x7dc   :  { %v1459_v63 = vmul.f32 %v1457_v60, %v1450_v61  ;;  %v1458_v57 = vmax.f32 %v1452_v62, 0.0  ;;  %v1454_v42 = vpop.f32.mrb[39].mxu0 }
 0x7de   :  { %v1460_v46 = vmul.f32 %v1458_v57, %v1454_v42 }
 0x7e0   :  { %v1461_v2 = vpack.c.bf16 %v1460_v46, %v1459_v63 }
 0x7e2   :  { %1871 = vmatmul.mubr.bf16.vlgmr.msra.gmra.mrb[28].mxu1 %v1461_v2 }
 0x8b5   :  { %v1560_v4 = vpop.f32.mrb[28].mxu1 }
 0x8b6   :  { %v1570_v56 = vadd.f32 %v1568_v3, %v1560_v4  ;;  %v1872_v5 = vpop.f32.mrb[29].mxu1 }
 0x8b7   :  { %v1563_v13 = vpop.f32.mrb[30].mxu1 }
 0x8b8   :  { %v1571_v7 = vadd.f32 %v1569_v1, %v1563_v13  ;;  %v1873_v9 = vpop.f32.mrb[31].mxu1  ;;  %v1572_v10 = vsel %vm78_vm1, %v1570_v56, 0.0  ;;  %v1580_v11 = vmul.f32 %v1570_v56, %v1570_v56 }
 0x8b9   :  { %1573 = vadd.xlane.f32.xlu0 %v1572_v10 }
 0x8ba   :  { %v1575_v18 = vsel %vm78_vm1, %v1571_v7, 0.0  ;;  %v1581_v41 = vmul.f32 %v1571_v7, %v1571_v7  ;;  %v1582_v49 = vsel %vm78_vm1, %v1580_v11, 0.0 }
 0x8bb   :  { %1576 = vadd.xlane.f32.xlu1 %v1575_v18 }
 0x8bc   :  { %v1585_v0 = vsel %vm78_vm1, %v1581_v41, 0.0 }
 0x8bd   :  { %1583 = vadd.xlane.f32.xlu0 %v1582_v49 }
 0x8bf   :  { %1586 = vadd.xlane.f32.xlu1 %v1585_v0 }
 0x946   :  { %v1574_v19 = vpop.xlane.xlu0 %1573 }
 0x947   :  { %v1578_v20 = vmul.f32 0.03125, %v1574_v19 }
 0x948   :  { %v1577_v22 = vpop.xlane.xlu1 %1576 }
 0x949   :  { %v1579_v23 = vmul.f32 0.03125, %v1577_v22  ;;  %v1590_v26 = vmul.f32 %v1578_v20, %v1578_v20  ;;  %v1594_v37 = vsub.f32 %v1570_v56, %v1578_v20 }
 0x94a   :  { %v1584_v24 = vpop.xlane.xlu0 %1583 }
 0x94b   :  { %v1588_v27 = vmul.f32 0.03125, %v1584_v24  ;;  %v1591_v30 = vmul.f32 %v1579_v23, %v1579_v23  ;;  %v1595_v17 = vsub.f32 %v1571_v7, %v1579_v23 }
 0x94c   :  { %v1587_v28 = vpop.xlane.xlu1 %1586 }
 0x94d   :  { %v1592_v31 = vsub.f32 %v1588_v27, %v1590_v26  ;;  %v1589_v32 = vmul.f32 0.03125, %v1587_v28 }
 0x94f   :  { %v1596_v33 = vadd.f32 1e-05, %v1592_v31  ;;  %v1593_v34 = vsub.f32 %v1589_v32, %v1591_v30 }
 0x951   :  { %2002 = vrsqrt.f32 %v1596_v33  ;;  %v1597_v35 = vadd.f32 1e-05, %v1593_v34 }
 0x953   :  { %2004 = vrsqrt.f32 %v1597_v35 }
 0x95b   :  { %v2003_v15 = vpop.eup %2002 }
 0x95c   :  { %v1600_v8 = vmul.f32 %v2003_v15, %v1594_v37 }
 0x95d   :  { %v2005_v6 = vpop.eup %2004 }
 0x95e   :  { %v1601_v16 = vmul.f32 %v2005_v6, %v1595_v17  ;;  %v1606_v29 = vmul.f32 %v1605_v38, %v1600_v8 }
 0x960   :  { %v1607_v40 = vmul.f32 %v1605_v38, %v1601_v16  ;;  %v1612_v43 = vadd.f32 %v1611_v25, %v1606_v29 }
 0x962   :  { %v1613_v44 = vadd.f32 %v1611_v25, %v1607_v40  ;;  %1614 = vst.msk [vmem:[#allocation3] sm:$0xff] %vm78_vm1, %v1612_v43 }
 0x964   :  { %1615 = vst.msk [vmem:[#allocation3 + $0x8] sm:$0xff] %vm78_vm1, %v1613_v44 }
 0x965   :  { %2019 = shalt.err (!%p2016_p4)
}
 0x966   :  { %s2020_s5 = scalar_lea.hbm %s2598_s15, 256 }
 0x967   :  { %p2021_p5 = scmp.ne.s32.totalorder %s2598_s15, %s2020_s5  ;;  %p2024_p6 = scmp.lt.u32.totalorder %s2020_s5, %s2598_s15 }
 0x969   :  { %p2026_p7 = pnand %p2024_p6, %p2021_p5 }
 0x96b   :  { %2029 = shalt.err (!%p2026_p7)
}
 0x96c   :  { %s2043_s19 = smov 128  }
 0x96d   :  { %1627 = dma.vmem_to_hbm [thread:$0]  %s1622_s10, 256, %s2598_s15, [#allocation4], %s2043_s19, %s2043_s19, %s2034_s3  }
 0x96e   :  { %2030 = dma.done.wait [#allocation4], 256  }
 0x96f   :  { %2031 = vsyncadd [#allocation4], 4294967040 }
 0x970   :  { %1631 = vsyncpa [#allocation4], 1 }

</bundles_post_ra>
